<compile_context>
chip_gen: v5e
topology: v5e:2x2
jax: 0.10.0
libtpu: 0.0.40
codegen_flags: <defaults>
</compile_context>

<pallas_src>
import jax
import jax.numpy as jnp
from jax import lax
from jax.experimental import pallas as pl
from jax.experimental.pallas import tpu as pltpu

LANE = 128
SUBLANE = 8


def lstm_last_step_kernel(gates_x_ref, w_hh_ref, w_out_ref, b_out_ref, out_ref):
    """LSTM recurrence (input projection precomputed) + final Linear, in VMEM.

    gates_x_ref: (T, Bp, 4*Hp)  precomputed x@W_ih^T + b_ih + b_hh, lane-aligned
    w_hh_ref:    (Hp, 4*Hp)     hidden->gates weights (pre-transposed, padded)
    w_out_ref:   (Hp, O)        output Linear weight (pre-transposed, padded)
    b_out_ref:   (1, O)
    out_ref:     (Bp, O)
    """
    T, Bp, G4 = gates_x_ref.shape
    Hp = G4 // 4

    w_hh = w_hh_ref[...]          # hoisted: loaded once, reused every step

    def step(t, carry):
        h, c = carry
        # Only the recurrent matmul sits on the serial dependency chain.
        gates = gates_x_ref[t] + jnp.dot(h, w_hh,
                                         preferred_element_type=jnp.float32)
        # PyTorch gate order i, f, g, o; each gate owns one 128-lane block.
        i_g = jax.nn.sigmoid(gates[:, 0 * Hp:1 * Hp])
        f_g = jax.nn.sigmoid(gates[:, 1 * Hp:2 * Hp])
        g_g = jnp.tanh(gates[:, 2 * Hp:3 * Hp])
        o_g = jax.nn.sigmoid(gates[:, 3 * Hp:4 * Hp])
        c_new = f_g * c + i_g * g_g
        h_new = o_g * jnp.tanh(c_new)
        return (h_new, c_new)

    h0 = jnp.zeros((Bp, Hp), jnp.float32)
    c0 = jnp.zeros((Bp, Hp), jnp.float32)
    h_last, _ = lax.fori_loop(0, T, step, (h0, c0), unroll=True)

    # output_layer(h[:, -1])
    out_ref[...] = (jnp.dot(h_last, w_out_ref[...],
                            preferred_element_type=jnp.float32)
                    + b_out_ref[...])


def _round_up(n, m):
    return ((n + m - 1) // m) * m


def _lane_align_gates(w, H, Hp):
    """(4H, N) PyTorch-stacked gate weights -> (N, 4*Hp): gate k occupies the
    lane-aligned column block [k*Hp, k*Hp+H); padded columns are zero."""
    N = w.shape[1]
    w4 = w.reshape(4, H, N)                       # (4, H, N)
    w4 = jnp.transpose(w4, (2, 0, 1))             # (N, 4, H)
    w4 = jnp.pad(w4, ((0, 0), (0, 0), (0, Hp - H)))
    return w4.reshape(N, 4 * Hp)


@jax.jit
def predict_simple_formula_net(x, w_ih, w_hh, b_ih, b_hh, w_out, b_out):
    """Forward pass matching the PyTorch module.

    x:     (B, T, I)  float32, batch_first
    w_ih:  (4H, I), w_hh: (4H, H), b_ih/b_hh: (4H,)
    w_out: (O, H),  b_out: (O,)
    returns (B, O)
    """
    B, T, I = x.shape
    H = w_hh.shape[1]
    O = w_out.shape[0]

    Hp = _round_up(H, LANE)       # each gate gets its own 128-lane block
    Bp = _round_up(B, SUBLANE)    # unmasked sublane loads/stores

    # NOTE: bf16 operand storage (v6e/v7x), a parallel batch grid axis
    # (v7x 2nd TensorCore) and T-tiling of gates_x only pay off at much larger
    # B/T; at these toy sizes the recurrence is pure latency, so keep f32,
    # no grid, fully VMEM-resident operands.

    # --- Lane-aligned, pre-transposed parameters --------------------------
    w_ih_p = _lane_align_gates(w_ih.astype(jnp.float32), H, Hp)         # (I, 4Hp)
    w_hh_p = _lane_align_gates(w_hh.astype(jnp.float32), H, Hp)         # (H, 4Hp)
    w_hh_p = jnp.pad(w_hh_p, ((0, Hp - H), (0, 0)))                     # (Hp, 4Hp)
    b4 = (b_ih + b_hh).astype(jnp.float32).reshape(4, H)
    b_p = jnp.pad(b4, ((0, 0), (0, Hp - H))).reshape(1, 4 * Hp)         # (1, 4Hp)
    w_out_p = jnp.pad(jnp.transpose(w_out).astype(jnp.float32),
                      ((0, Hp - H), (0, 0)))                            # (Hp, O)
    b_out_r = b_out.astype(jnp.float32).reshape(1, O)                   # (1, O)

    # --- Hoist the input projection off the serial recurrence -------------
    x_p = jnp.pad(x.astype(jnp.float32), ((0, Bp - B), (0, 0), (0, 0)))  # (Bp,T,I)
    x_tm = jnp.transpose(x_p, (1, 0, 2))                                 # (T,Bp,I)
    gates_x = (x_tm.reshape(T * Bp, I) @ w_ih_p + b_p).reshape(T, Bp, 4 * Hp)

    out_p = pl.pallas_call(
        lstm_last_step_kernel,
        out_shape=jax.ShapeDtypeStruct((Bp, O), jnp.float32),
        in_specs=[pl.BlockSpec(memory_space=pltpu.MemorySpace.VMEM)] * 4,
        out_specs=pl.BlockSpec(memory_space=pltpu.MemorySpace.VMEM),
    )(gates_x, w_hh_p, w_out_p, b_out_r)

    return out_p[:B]


def reference_forward(x, w_ih, w_hh, b_ih, b_hh, w_out, b_out):
    """Pure-JAX reference of the PyTorch forward (for correctness check)."""
    B, T, I = x.shape
    H = w_hh.shape[1]

    def step(carry, x_t):
        h, c = carry
        gates = x_t @ w_ih.T + h @ w_hh.T + b_ih + b_hh
        i_g = jax.nn.sigmoid(gates[:, 0:H])
        f_g = jax.nn.sigmoid(gates[:, H:2 * H])
        g_g = jnp.tanh(gates[:, 2 * H:3 * H])
        o_g = jax.nn.sigmoid(gates[:, 3 * H:4 * H])
        c = f_g * c + i_g * g_g
        h = o_g * jnp.tanh(c)
        return (h, c), None

    h0 = jnp.zeros((B, H), jnp.float32)
    c0 = jnp.zeros((B, H), jnp.float32)
    (h_last, _), _ = lax.scan(step, (h0, c0), jnp.transpose(x, (1, 0, 2)))
    return h_last @ w_out.T + b_out


def init_params(key, input_size, hidden_size, output_size):
    """Deterministic init mirroring the module's __init__ (shapes + init styles)."""
    H, I, O = hidden_size, input_size, output_size
    k_ih, k_hh, k_bi, k_bh, k_wo, k_bo = jax.random.split(key, 6)

    # nn.init.xavier_normal_ on weight_ih_l0: (4H, I)
    std = (2.0 / (4 * H + I)) ** 0.5
    w_ih = std * jax.random.normal(k_ih, (4 * H, I), jnp.float32)

    # nn.init.orthogonal_ on weight_hh_l0: (4H, H) via QR
    a = jax.random.normal(k_hh, (4 * H, H), jnp.float32)
    q, r = jnp.linalg.qr(a)
    w_hh = q * jnp.sign(jnp.diagonal(r))[None, :]

    # LSTM / Linear biases & Linear weight: default U(-1/sqrt(H), 1/sqrt(H))
    bound = 1.0 / (H ** 0.5)
    b_ih = jax.random.uniform(k_bi, (4 * H,), jnp.float32, -bound, bound)
    b_hh = jax.random.uniform(k_bh, (4 * H,), jnp.float32, -bound, bound)
    w_out = jax.random.uniform(k_wo, (O, H), jnp.float32, -bound, bound)
    b_out = jax.random.uniform(k_bo, (O,), jnp.float32, -bound, bound)
    return w_ih, w_hh, b_ih, b_hh, w_out, b_out


if __name__ == "__main__":
    # Small shapes consistent with the module: batch=2, seq=8, input=4,
    # hidden=32, output=2.
    B, T, I, H, O = 2, 8, 4, 32, 2

    key = jax.random.PRNGKey(0)
    k_x, k_p = jax.random.split(key)
    x = jax.random.normal(k_x, (B, T, I), jnp.float32)
    params = init_params(k_p, I, H, O)

    out = predict_simple_formula_net(x, *params)
    out = jax.block_until_ready(out)

    ref = reference_forward(x, *params)
    assert out.shape == (B, O)
    assert jnp.allclose(out, ref, atol=1e-4, rtol=1e-4), (out, ref)

    print("KERNEL_OK")
</pallas_src>

<mosaic_0001>
module attributes {stable_mosaic.version = 11 : i64} {
  func.func @lstm_last_step_kernel(%arg0: memref<8x8x512xf32, #tpu.memory_space<vmem>>, %arg1: memref<128x512xf32, #tpu.memory_space<vmem>>, %arg2: memref<128x2xf32, #tpu.memory_space<vmem>>, %arg3: memref<1x2xf32, #tpu.memory_space<vmem>>, %arg4: memref<8x2xf32, #tpu.memory_space<vmem>>) attributes {dimension_semantics = [], scalar_prefetch = 0 : i64, scratch_operands = 0 : i64, tpu.core_type = #tpu.core_type<tc>} {
    %c0 = arith.constant 0 : index
    %c0_0 = arith.constant 0 : index
    %0 = vector.load %arg1[%c0, %c0_0] : memref<128x512xf32, #tpu.memory_space<vmem>>, vector<128x512xf32>
    %cst = arith.constant 0.000000e+00 : f32
    %1 = vector.broadcast %cst : f32 to vector<8x128xf32>
    %cst_1 = arith.constant 0.000000e+00 : f32
    %2 = vector.broadcast %cst_1 : f32 to vector<8x128xf32>
    %c0_i32 = arith.constant 0 : i32
    %3 = arith.index_cast %c0_i32 : i32 to index
    %c0_2 = arith.constant 0 : index
    %c0_3 = arith.constant 0 : index
    %4 = vector.load %arg0[%3, %c0_2, %c0_3] : memref<8x8x512xf32, #tpu.memory_space<vmem>>, vector<1x8x512xf32>
    %5 = vector.shape_cast %4 : vector<1x8x512xf32> to vector<8x512xf32>
    %cst_4 = arith.constant dense<0.000000e+00> : vector<8x512xf32>
    %6 = tpu.matmul %1, %0, %cst_4 {dimension_numbers = #tpu.dot_dimension_numbers<[1], [0], [0], [1], [0, 0, 1, 1], [], []>} : vector<8x128xf32>, vector<128x512xf32>, vector<8x512xf32> -> vector<8x512xf32>
    %7 = arith.addf %5, %6 : vector<8x512xf32>
    %8 = vector.extract_strided_slice %7 {offsets = [0, 0], sizes = [8, 128], strides = [1, 1]} : vector<8x512xf32> to vector<8x128xf32>
    %9 = arith.negf %8 : vector<8x128xf32>
    %10 = math.exp %9 : vector<8x128xf32>
    %cst_5 = arith.constant 1.000000e+00 : f32
    %11 = vector.broadcast %cst_5 : f32 to vector<8x128xf32>
    %12 = arith.addf %11, %10 : vector<8x128xf32>
    %13 = arith.divf %11, %12 : vector<8x128xf32>
    %14 = vector.extract_strided_slice %7 {offsets = [0, 128], sizes = [8, 128], strides = [1, 1]} : vector<8x512xf32> to vector<8x128xf32>
    %15 = arith.negf %14 : vector<8x128xf32>
    %16 = math.exp %15 : vector<8x128xf32>
    %cst_6 = arith.constant 1.000000e+00 : f32
    %17 = vector.broadcast %cst_6 : f32 to vector<8x128xf32>
    %18 = arith.addf %17, %16 : vector<8x128xf32>
    %19 = arith.divf %17, %18 : vector<8x128xf32>
    %20 = vector.extract_strided_slice %7 {offsets = [0, 256], sizes = [8, 128], strides = [1, 1]} : vector<8x512xf32> to vector<8x128xf32>
    %21 = math.tanh %20 : vector<8x128xf32>
    %22 = vector.extract_strided_slice %7 {offsets = [0, 384], sizes = [8, 128], strides = [1, 1]} : vector<8x512xf32> to vector<8x128xf32>
    %23 = arith.negf %22 : vector<8x128xf32>
    %24 = math.exp %23 : vector<8x128xf32>
    %cst_7 = arith.constant 1.000000e+00 : f32
    %25 = vector.broadcast %cst_7 : f32 to vector<8x128xf32>
    %26 = arith.addf %25, %24 : vector<8x128xf32>
    %27 = arith.divf %25, %26 : vector<8x128xf32>
    %28 = arith.mulf %19, %2 : vector<8x128xf32>
    %29 = arith.mulf %13, %21 : vector<8x128xf32>
    %30 = arith.addf %28, %29 : vector<8x128xf32>
    %31 = math.tanh %30 : vector<8x128xf32>
    %32 = arith.mulf %27, %31 : vector<8x128xf32>
    %c1_i32 = arith.constant 1 : i32
    %33 = arith.index_cast %c1_i32 : i32 to index
    %c0_8 = arith.constant 0 : index
    %c0_9 = arith.constant 0 : index
    %34 = vector.load %arg0[%33, %c0_8, %c0_9] : memref<8x8x512xf32, #tpu.memory_space<vmem>>, vector<1x8x512xf32>
    %35 = vector.shape_cast %34 : vector<1x8x512xf32> to vector<8x512xf32>
    %cst_10 = arith.constant dense<0.000000e+00> : vector<8x512xf32>
    %36 = tpu.matmul %32, %0, %cst_10 {dimension_numbers = #tpu.dot_dimension_numbers<[1], [0], [0], [1], [0, 0, 1, 1], [], []>} : vector<8x128xf32>, vector<128x512xf32>, vector<8x512xf32> -> vector<8x512xf32>
    %37 = arith.addf %35, %36 : vector<8x512xf32>
    %38 = vector.extract_strided_slice %37 {offsets = [0, 0], sizes = [8, 128], strides = [1, 1]} : vector<8x512xf32> to vector<8x128xf32>
    %39 = arith.negf %38 : vector<8x128xf32>
    %40 = math.exp %39 : vector<8x128xf32>
    %cst_11 = arith.constant 1.000000e+00 : f32
    %41 = vector.broadcast %cst_11 : f32 to vector<8x128xf32>
    %42 = arith.addf %41, %40 : vector<8x128xf32>
    %43 = arith.divf %41, %42 : vector<8x128xf32>
    %44 = vector.extract_strided_slice %37 {offsets = [0, 128], sizes = [8, 128], strides = [1, 1]} : vector<8x512xf32> to vector<8x128xf32>
    %45 = arith.negf %44 : vector<8x128xf32>
    %46 = math.exp %45 : vector<8x128xf32>
    %cst_12 = arith.constant 1.000000e+00 : f32
    %47 = vector.broadcast %cst_12 : f32 to vector<8x128xf32>
    %48 = arith.addf %47, %46 : vector<8x128xf32>
    %49 = arith.divf %47, %48 : vector<8x128xf32>
    %50 = vector.extract_strided_slice %37 {offsets = [0, 256], sizes = [8, 128], strides = [1, 1]} : vector<8x512xf32> to vector<8x128xf32>
    %51 = math.tanh %50 : vector<8x128xf32>
    %52 = vector.extract_strided_slice %37 {offsets = [0, 384], sizes = [8, 128], strides = [1, 1]} : vector<8x512xf32> to vector<8x128xf32>
    %53 = arith.negf %52 : vector<8x128xf32>
    %54 = math.exp %53 : vector<8x128xf32>
    %cst_13 = arith.constant 1.000000e+00 : f32
    %55 = vector.broadcast %cst_13 : f32 to vector<8x128xf32>
    %56 = arith.addf %55, %54 : vector<8x128xf32>
    %57 = arith.divf %55, %56 : vector<8x128xf32>
    %58 = arith.mulf %49, %30 : vector<8x128xf32>
    %59 = arith.mulf %43, %51 : vector<8x128xf32>
    %60 = arith.addf %58, %59 : vector<8x128xf32>
    %61 = math.tanh %60 : vector<8x128xf32>
    %62 = arith.mulf %57, %61 : vector<8x128xf32>
    %c2_i32 = arith.constant 2 : i32
    %63 = arith.index_cast %c2_i32 : i32 to index
    %c0_14 = arith.constant 0 : index
    %c0_15 = arith.constant 0 : index
    %64 = vector.load %arg0[%63, %c0_14, %c0_15] : memref<8x8x512xf32, #tpu.memory_space<vmem>>, vector<1x8x512xf32>
    %65 = vector.shape_cast %64 : vector<1x8x512xf32> to vector<8x512xf32>
    %cst_16 = arith.constant dense<0.000000e+00> : vector<8x512xf32>
    %66 = tpu.matmul %62, %0, %cst_16 {dimension_numbers = #tpu.dot_dimension_numbers<[1], [0], [0], [1], [0, 0, 1, 1], [], []>} : vector<8x128xf32>, vector<128x512xf32>, vector<8x512xf32> -> vector<8x512xf32>
    %67 = arith.addf %65, %66 : vector<8x512xf32>
    %68 = vector.extract_strided_slice %67 {offsets = [0, 0], sizes = [8, 128], strides = [1, 1]} : vector<8x512xf32> to vector<8x128xf32>
    %69 = arith.negf %68 : vector<8x128xf32>
    %70 = math.exp %69 : vector<8x128xf32>
    %cst_17 = arith.constant 1.000000e+00 : f32
    %71 = vector.broadcast %cst_17 : f32 to vector<8x128xf32>
    %72 = arith.addf %71, %70 : vector<8x128xf32>
    %73 = arith.divf %71, %72 : vector<8x128xf32>
    %74 = vector.extract_strided_slice %67 {offsets = [0, 128], sizes = [8, 128], strides = [1, 1]} : vector<8x512xf32> to vector<8x128xf32>
    %75 = arith.negf %74 : vector<8x128xf32>
    %76 = math.exp %75 : vector<8x128xf32>
    %cst_18 = arith.constant 1.000000e+00 : f32
    %77 = vector.broadcast %cst_18 : f32 to vector<8x128xf32>
    %78 = arith.addf %77, %76 : vector<8x128xf32>
    %79 = arith.divf %77, %78 : vector<8x128xf32>
    %80 = vector.extract_strided_slice %67 {offsets = [0, 256], sizes = [8, 128], strides = [1, 1]} : vector<8x512xf32> to vector<8x128xf32>
    %81 = math.tanh %80 : vector<8x128xf32>
    %82 = vector.extract_strided_slice %67 {offsets = [0, 384], sizes = [8, 128], strides = [1, 1]} : vector<8x512xf32> to vector<8x128xf32>
    %83 = arith.negf %82 : vector<8x128xf32>
    %84 = math.exp %83 : vector<8x128xf32>
    %cst_19 = arith.constant 1.000000e+00 : f32
    %85 = vector.broadcast %cst_19 : f32 to vector<8x128xf32>
    %86 = arith.addf %85, %84 : vector<8x128xf32>
    %87 = arith.divf %85, %86 : vector<8x128xf32>
    %88 = arith.mulf %79, %60 : vector<8x128xf32>
    %89 = arith.mulf %73, %81 : vector<8x128xf32>
    %90 = arith.addf %88, %89 : vector<8x128xf32>
    %91 = math.tanh %90 : vector<8x128xf32>
    %92 = arith.mulf %87, %91 : vector<8x128xf32>
    %c3_i32 = arith.constant 3 : i32
    %93 = arith.index_cast %c3_i32 : i32 to index
    %c0_20 = arith.constant 0 : index
    %c0_21 = arith.constant 0 : index
    %94 = vector.load %arg0[%93, %c0_20, %c0_21] : memref<8x8x512xf32, #tpu.memory_space<vmem>>, vector<1x8x512xf32>
    %95 = vector.shape_cast %94 : vector<1x8x512xf32> to vector<8x512xf32>
    %cst_22 = arith.constant dense<0.000000e+00> : vector<8x512xf32>
    %96 = tpu.matmul %92, %0, %cst_22 {dimension_numbers = #tpu.dot_dimension_numbers<[1], [0], [0], [1], [0, 0, 1, 1], [], []>} : vector<8x128xf32>, vector<128x512xf32>, vector<8x512xf32> -> vector<8x512xf32>
    %97 = arith.addf %95, %96 : vector<8x512xf32>
    %98 = vector.extract_strided_slice %97 {offsets = [0, 0], sizes = [8, 128], strides = [1, 1]} : vector<8x512xf32> to vector<8x128xf32>
    %99 = arith.negf %98 : vector<8x128xf32>
    %100 = math.exp %99 : vector<8x128xf32>
    %cst_23 = arith.constant 1.000000e+00 : f32
    %101 = vector.broadcast %cst_23 : f32 to vector<8x128xf32>
    %102 = arith.addf %101, %100 : vector<8x128xf32>
    %103 = arith.divf %101, %102 : vector<8x128xf32>
    %104 = vector.extract_strided_slice %97 {offsets = [0, 128], sizes = [8, 128], strides = [1, 1]} : vector<8x512xf32> to vector<8x128xf32>
    %105 = arith.negf %104 : vector<8x128xf32>
    %106 = math.exp %105 : vector<8x128xf32>
    %cst_24 = arith.constant 1.000000e+00 : f32
    %107 = vector.broadcast %cst_24 : f32 to vector<8x128xf32>
    %108 = arith.addf %107, %106 : vector<8x128xf32>
    %109 = arith.divf %107, %108 : vector<8x128xf32>
    %110 = vector.extract_strided_slice %97 {offsets = [0, 256], sizes = [8, 128], strides = [1, 1]} : vector<8x512xf32> to vector<8x128xf32>
    %111 = math.tanh %110 : vector<8x128xf32>
    %112 = vector.extract_strided_slice %97 {offsets = [0, 384], sizes = [8, 128], strides = [1, 1]} : vector<8x512xf32> to vector<8x128xf32>
    %113 = arith.negf %112 : vector<8x128xf32>
    %114 = math.exp %113 : vector<8x128xf32>
    %cst_25 = arith.constant 1.000000e+00 : f32
    %115 = vector.broadcast %cst_25 : f32 to vector<8x128xf32>
    %116 = arith.addf %115, %114 : vector<8x128xf32>
    %117 = arith.divf %115, %116 : vector<8x128xf32>
    %118 = arith.mulf %109, %90 : vector<8x128xf32>
    %119 = arith.mulf %103, %111 : vector<8x128xf32>
    %120 = arith.addf %118, %119 : vector<8x128xf32>
    %121 = math.tanh %120 : vector<8x128xf32>
    %122 = arith.mulf %117, %121 : vector<8x128xf32>
    %c4_i32 = arith.constant 4 : i32
    %123 = arith.index_cast %c4_i32 : i32 to index
    %c0_26 = arith.constant 0 : index
    %c0_27 = arith.constant 0 : index
    %124 = vector.load %arg0[%123, %c0_26, %c0_27] : memref<8x8x512xf32, #tpu.memory_space<vmem>>, vector<1x8x512xf32>
    %125 = vector.shape_cast %124 : vector<1x8x512xf32> to vector<8x512xf32>
    %cst_28 = arith.constant dense<0.000000e+00> : vector<8x512xf32>
    %126 = tpu.matmul %122, %0, %cst_28 {dimension_numbers = #tpu.dot_dimension_numbers<[1], [0], [0], [1], [0, 0, 1, 1], [], []>} : vector<8x128xf32>, vector<128x512xf32>, vector<8x512xf32> -> vector<8x512xf32>
    %127 = arith.addf %125, %126 : vector<8x512xf32>
    %128 = vector.extract_strided_slice %127 {offsets = [0, 0], sizes = [8, 128], strides = [1, 1]} : vector<8x512xf32> to vector<8x128xf32>
    %129 = arith.negf %128 : vector<8x128xf32>
    %130 = math.exp %129 : vector<8x128xf32>
    %cst_29 = arith.constant 1.000000e+00 : f32
    %131 = vector.broadcast %cst_29 : f32 to vector<8x128xf32>
    %132 = arith.addf %131, %130 : vector<8x128xf32>
    %133 = arith.divf %131, %132 : vector<8x128xf32>
    %134 = vector.extract_strided_slice %127 {offsets = [0, 128], sizes = [8, 128], strides = [1, 1]} : vector<8x512xf32> to vector<8x128xf32>
    %135 = arith.negf %134 : vector<8x128xf32>
    %136 = math.exp %135 : vector<8x128xf32>
    %cst_30 = arith.constant 1.000000e+00 : f32
    %137 = vector.broadcast %cst_30 : f32 to vector<8x128xf32>
    %138 = arith.addf %137, %136 : vector<8x128xf32>
    %139 = arith.divf %137, %138 : vector<8x128xf32>
    %140 = vector.extract_strided_slice %127 {offsets = [0, 256], sizes = [8, 128], strides = [1, 1]} : vector<8x512xf32> to vector<8x128xf32>
    %141 = math.tanh %140 : vector<8x128xf32>
    %142 = vector.extract_strided_slice %127 {offsets = [0, 384], sizes = [8, 128], strides = [1, 1]} : vector<8x512xf32> to vector<8x128xf32>
    %143 = arith.negf %142 : vector<8x128xf32>
    %144 = math.exp %143 : vector<8x128xf32>
    %cst_31 = arith.constant 1.000000e+00 : f32
    %145 = vector.broadcast %cst_31 : f32 to vector<8x128xf32>
    %146 = arith.addf %145, %144 : vector<8x128xf32>
    %147 = arith.divf %145, %146 : vector<8x128xf32>
    %148 = arith.mulf %139, %120 : vector<8x128xf32>
    %149 = arith.mulf %133, %141 : vector<8x128xf32>
    %150 = arith.addf %148, %149 : vector<8x128xf32>
    %151 = math.tanh %150 : vector<8x128xf32>
    %152 = arith.mulf %147, %151 : vector<8x128xf32>
    %c5_i32 = arith.constant 5 : i32
    %153 = arith.index_cast %c5_i32 : i32 to index
    %c0_32 = arith.constant 0 : index
    %c0_33 = arith.constant 0 : index
    %154 = vector.load %arg0[%153, %c0_32, %c0_33] : memref<8x8x512xf32, #tpu.memory_space<vmem>>, vector<1x8x512xf32>
    %155 = vector.shape_cast %154 : vector<1x8x512xf32> to vector<8x512xf32>
    %cst_34 = arith.constant dense<0.000000e+00> : vector<8x512xf32>
    %156 = tpu.matmul %152, %0, %cst_34 {dimension_numbers = #tpu.dot_dimension_numbers<[1], [0], [0], [1], [0, 0, 1, 1], [], []>} : vector<8x128xf32>, vector<128x512xf32>, vector<8x512xf32> -> vector<8x512xf32>
    %157 = arith.addf %155, %156 : vector<8x512xf32>
    %158 = vector.extract_strided_slice %157 {offsets = [0, 0], sizes = [8, 128], strides = [1, 1]} : vector<8x512xf32> to vector<8x128xf32>
    %159 = arith.negf %158 : vector<8x128xf32>
    %160 = math.exp %159 : vector<8x128xf32>
    %cst_35 = arith.constant 1.000000e+00 : f32
    %161 = vector.broadcast %cst_35 : f32 to vector<8x128xf32>
    %162 = arith.addf %161, %160 : vector<8x128xf32>
    %163 = arith.divf %161, %162 : vector<8x128xf32>
    %164 = vector.extract_strided_slice %157 {offsets = [0, 128], sizes = [8, 128], strides = [1, 1]} : vector<8x512xf32> to vector<8x128xf32>
    %165 = arith.negf %164 : vector<8x128xf32>
    %166 = math.exp %165 : vector<8x128xf32>
    %cst_36 = arith.constant 1.000000e+00 : f32
    %167 = vector.broadcast %cst_36 : f32 to vector<8x128xf32>
    %168 = arith.addf %167, %166 : vector<8x128xf32>
    %169 = arith.divf %167, %168 : vector<8x128xf32>
    %170 = vector.extract_strided_slice %157 {offsets = [0, 256], sizes = [8, 128], strides = [1, 1]} : vector<8x512xf32> to vector<8x128xf32>
    %171 = math.tanh %170 : vector<8x128xf32>
    %172 = vector.extract_strided_slice %157 {offsets = [0, 384], sizes = [8, 128], strides = [1, 1]} : vector<8x512xf32> to vector<8x128xf32>
    %173 = arith.negf %172 : vector<8x128xf32>
    %174 = math.exp %173 : vector<8x128xf32>
    %cst_37 = arith.constant 1.000000e+00 : f32
    %175 = vector.broadcast %cst_37 : f32 to vector<8x128xf32>
    %176 = arith.addf %175, %174 : vector<8x128xf32>
    %177 = arith.divf %175, %176 : vector<8x128xf32>
    %178 = arith.mulf %169, %150 : vector<8x128xf32>
    %179 = arith.mulf %163, %171 : vector<8x128xf32>
    %180 = arith.addf %178, %179 : vector<8x128xf32>
    %181 = math.tanh %180 : vector<8x128xf32>
    %182 = arith.mulf %177, %181 : vector<8x128xf32>
    %c6_i32 = arith.constant 6 : i32
    %183 = arith.index_cast %c6_i32 : i32 to index
    %c0_38 = arith.constant 0 : index
    %c0_39 = arith.constant 0 : index
    %184 = vector.load %arg0[%183, %c0_38, %c0_39] : memref<8x8x512xf32, #tpu.memory_space<vmem>>, vector<1x8x512xf32>
    %185 = vector.shape_cast %184 : vector<1x8x512xf32> to vector<8x512xf32>
    %cst_40 = arith.constant dense<0.000000e+00> : vector<8x512xf32>
    %186 = tpu.matmul %182, %0, %cst_40 {dimension_numbers = #tpu.dot_dimension_numbers<[1], [0], [0], [1], [0, 0, 1, 1], [], []>} : vector<8x128xf32>, vector<128x512xf32>, vector<8x512xf32> -> vector<8x512xf32>
    %187 = arith.addf %185, %186 : vector<8x512xf32>
    %188 = vector.extract_strided_slice %187 {offsets = [0, 0], sizes = [8, 128], strides = [1, 1]} : vector<8x512xf32> to vector<8x128xf32>
    %189 = arith.negf %188 : vector<8x128xf32>
    %190 = math.exp %189 : vector<8x128xf32>
    %cst_41 = arith.constant 1.000000e+00 : f32
    %191 = vector.broadcast %cst_41 : f32 to vector<8x128xf32>
    %192 = arith.addf %191, %190 : vector<8x128xf32>
    %193 = arith.divf %191, %192 : vector<8x128xf32>
    %194 = vector.extract_strided_slice %187 {offsets = [0, 128], sizes = [8, 128], strides = [1, 1]} : vector<8x512xf32> to vector<8x128xf32>
    %195 = arith.negf %194 : vector<8x128xf32>
    %196 = math.exp %195 : vector<8x128xf32>
    %cst_42 = arith.constant 1.000000e+00 : f32
    %197 = vector.broadcast %cst_42 : f32 to vector<8x128xf32>
    %198 = arith.addf %197, %196 : vector<8x128xf32>
    %199 = arith.divf %197, %198 : vector<8x128xf32>
    %200 = vector.extract_strided_slice %187 {offsets = [0, 256], sizes = [8, 128], strides = [1, 1]} : vector<8x512xf32> to vector<8x128xf32>
    %201 = math.tanh %200 : vector<8x128xf32>
    %202 = vector.extract_strided_slice %187 {offsets = [0, 384], sizes = [8, 128], strides = [1, 1]} : vector<8x512xf32> to vector<8x128xf32>
    %203 = arith.negf %202 : vector<8x128xf32>
    %204 = math.exp %203 : vector<8x128xf32>
    %cst_43 = arith.constant 1.000000e+00 : f32
    %205 = vector.broadcast %cst_43 : f32 to vector<8x128xf32>
    %206 = arith.addf %205, %204 : vector<8x128xf32>
    %207 = arith.divf %205, %206 : vector<8x128xf32>
    %208 = arith.mulf %199, %180 : vector<8x128xf32>
    %209 = arith.mulf %193, %201 : vector<8x128xf32>
    %210 = arith.addf %208, %209 : vector<8x128xf32>
    %211 = math.tanh %210 : vector<8x128xf32>
    %212 = arith.mulf %207, %211 : vector<8x128xf32>
    %c7_i32 = arith.constant 7 : i32
    %213 = arith.index_cast %c7_i32 : i32 to index
    %c0_44 = arith.constant 0 : index
    %c0_45 = arith.constant 0 : index
    %214 = vector.load %arg0[%213, %c0_44, %c0_45] : memref<8x8x512xf32, #tpu.memory_space<vmem>>, vector<1x8x512xf32>
    %215 = vector.shape_cast %214 : vector<1x8x512xf32> to vector<8x512xf32>
    %cst_46 = arith.constant dense<0.000000e+00> : vector<8x512xf32>
    %216 = tpu.matmul %212, %0, %cst_46 {dimension_numbers = #tpu.dot_dimension_numbers<[1], [0], [0], [1], [0, 0, 1, 1], [], []>} : vector<8x128xf32>, vector<128x512xf32>, vector<8x512xf32> -> vector<8x512xf32>
    %217 = arith.addf %215, %216 : vector<8x512xf32>
    %218 = vector.extract_strided_slice %217 {offsets = [0, 0], sizes = [8, 128], strides = [1, 1]} : vector<8x512xf32> to vector<8x128xf32>
    %219 = arith.negf %218 : vector<8x128xf32>
    %220 = math.exp %219 : vector<8x128xf32>
    %cst_47 = arith.constant 1.000000e+00 : f32
    %221 = vector.broadcast %cst_47 : f32 to vector<8x128xf32>
    %222 = arith.addf %221, %220 : vector<8x128xf32>
    %223 = arith.divf %221, %222 : vector<8x128xf32>
    %224 = vector.extract_strided_slice %217 {offsets = [0, 128], sizes = [8, 128], strides = [1, 1]} : vector<8x512xf32> to vector<8x128xf32>
    %225 = arith.negf %224 : vector<8x128xf32>
    %226 = math.exp %225 : vector<8x128xf32>
    %cst_48 = arith.constant 1.000000e+00 : f32
    %227 = vector.broadcast %cst_48 : f32 to vector<8x128xf32>
    %228 = arith.addf %227, %226 : vector<8x128xf32>
    %229 = arith.divf %227, %228 : vector<8x128xf32>
    %230 = vector.extract_strided_slice %217 {offsets = [0, 256], sizes = [8, 128], strides = [1, 1]} : vector<8x512xf32> to vector<8x128xf32>
    %231 = math.tanh %230 : vector<8x128xf32>
    %232 = vector.extract_strided_slice %217 {offsets = [0, 384], sizes = [8, 128], strides = [1, 1]} : vector<8x512xf32> to vector<8x128xf32>
    %233 = arith.negf %232 : vector<8x128xf32>
    %234 = math.exp %233 : vector<8x128xf32>
    %cst_49 = arith.constant 1.000000e+00 : f32
    %235 = vector.broadcast %cst_49 : f32 to vector<8x128xf32>
    %236 = arith.addf %235, %234 : vector<8x128xf32>
    %237 = arith.divf %235, %236 : vector<8x128xf32>
    %238 = arith.mulf %229, %210 : vector<8x128xf32>
    %239 = arith.mulf %223, %231 : vector<8x128xf32>
    %240 = arith.addf %238, %239 : vector<8x128xf32>
    %241 = math.tanh %240 : vector<8x128xf32>
    %242 = arith.mulf %237, %241 : vector<8x128xf32>
    %c8_i32 = arith.constant 8 : i32
    %c0_50 = arith.constant 0 : index
    %c0_51 = arith.constant 0 : index
    %243 = vector.load %arg2[%c0_50, %c0_51] : memref<128x2xf32, #tpu.memory_space<vmem>>, vector<128x2xf32>
    %cst_52 = arith.constant dense<0.000000e+00> : vector<8x2xf32>
    %244 = tpu.matmul %242, %243, %cst_52 {dimension_numbers = #tpu.dot_dimension_numbers<[1], [0], [0], [1], [0, 0, 1, 1], [], []>} : vector<8x128xf32>, vector<128x2xf32>, vector<8x2xf32> -> vector<8x2xf32>
    %c0_53 = arith.constant 0 : index
    %c0_54 = arith.constant 0 : index
    %245 = vector.load %arg3[%c0_53, %c0_54] : memref<1x2xf32, #tpu.memory_space<vmem>>, vector<1x2xf32>
    %246 = vector.broadcast %245 : vector<1x2xf32> to vector<8x2xf32>
    %247 = arith.addf %244, %246 : vector<8x2xf32>
    %c0_55 = arith.constant 0 : index
    %c0_56 = arith.constant 0 : index
    %248 = vector.load %arg4[%c0_55, %c0_56] : memref<8x2xf32, #tpu.memory_space<vmem>>, vector<8x2xf32>
    tpu.vector_store %arg4[%c0_55, %c0_56], %247 {strides = array<i32>} : memref<8x2xf32, #tpu.memory_space<vmem>>, vector<8x2xf32>,
    return
  }
}

</mosaic_0001>

<bundles_post_ra>
// kernel: predict_simple_formula_net.1
= control target key start
LH: loop header
LB: loop body
LE: loop exit
PB: predicated region body
PF: predicated region fallthrough
CT: control target
= control target key end

     0   :  { %v1588_v60 = vmov 0.0   ;;  %s2944_s1 = inlined_call_operand.vmem [shape: f32[128,512], index: 1, kind: input, shape index: {}]   ;;  %s2945_s0 = inlined_call_operand.vmem [shape: f32[8,8,512], index: 0, kind: input, shape index: {}]   ;;  %s2946_s3 = inlined_call_operand.vmem [shape: f32[1,2], index: 3, kind: input, shape index: {}]   ;;  %s2947_s2 = inlined_call_operand.vmem [shape: f32[128,2], index: 2, kind: input, shape index: {}]   ;;  %s2948_s4 = inlined_call_operand.vmem [shape: f32[8,2], index: 4, kind: output, shape index: {}]  }
   0x1   :  { %v1617_v0 = vld [vmem:[%s2944_s1 + $0x1e0] sm:$0xff]  ;;  %v1622_v1 = vld [vmem:[%s2944_s1 + $0x1e8] sm:$0xff]  ;;  %v1627_v2 = vld [vmem:[%s2944_s1 + $0x1f8] sm:$0xff] }
   0x2   :  { %3055 = vst [vmem:[#allocation2_spill] sm:$0xff] %v1627_v2  ;;  %85 = vmatpush.msra.mxu0 %v1617_v0  ;;  %105 = vmatpush.msra.mxu1 %v1622_v1  ;;  %v1634_v3 = vld [vmem:[%s2944_s1 + $0x1c0] sm:$0xff]  ;;  %v1639_v4 = vld [vmem:[%s2944_s1 + $0x1c8] sm:$0xff]  ;;  %v1644_v5 = vld [vmem:[%s2944_s1 + $0x1d8] sm:$0xff] }
   0x3   :  { %145 = vmatpush.msra.mxu3 %v1627_v2  ;;  %v1650_v6 = vld [vmem:[%s2944_s1 + $0x1a0] sm:$0xff]  ;;  %v1655_v7 = vld [vmem:[%s2944_s1 + $0x1a8] sm:$0xff]  ;;  %v1662_v8 = vld [vmem:[%s2944_s1 + $0x1b8] sm:$0xff] }
   0x4   :  { %86 = vmatpush.msra.mxu0 %v1634_v3  ;;  %106 = vmatpush.msra.mxu1 %v1639_v4  ;;  %v1668_v9 = vld [vmem:[%s2944_s1 + $0x180] sm:$0xff]  ;;  %v1673_v10 = vld [vmem:[%s2944_s1 + $0x188] sm:$0xff]  ;;  %v1680_v11 = vld [vmem:[%s2944_s1 + $0x198] sm:$0xff] }
   0x5   :  { %146 = vmatpush.msra.mxu3 %v1644_v5  ;;  %v1686_v12 = vld [vmem:[%s2944_s1 + $0x160] sm:$0xff]  ;;  %v1691_v13 = vld [vmem:[%s2944_s1 + $0x168] sm:$0xff]  ;;  %v1698_v14 = vld [vmem:[%s2944_s1 + $0x178] sm:$0xff] }
   0x6   :  { %87 = vmatpush.msra.mxu0 %v1650_v6  ;;  %107 = vmatpush.msra.mxu1 %v1655_v7  ;;  %v1704_v15 = vld [vmem:[%s2944_s1 + $0x140] sm:$0xff]  ;;  %v1709_v16 = vld [vmem:[%s2944_s1 + $0x148] sm:$0xff]  ;;  %v1714_v17 = vld [vmem:[%s2944_s1 + $0x1f0] sm:$0xff] }
   0x7   :  { %147 = vmatpush.msra.mxu3 %v1662_v8  ;;  %v1721_v18 = vld [vmem:[%s2944_s1 + $0x158] sm:$0xff]  ;;  %v1726_v19 = vld [vmem:[%s2944_s1 + $0x1d0] sm:$0xff]  ;;  %v1732_v20 = vld [vmem:[%s2944_s1 + $0x120] sm:$0xff]  ;;  %125 = vmatpush.msra.mxu2 %v1714_v17 }
   0x8   :  { %88 = vmatpush.msra.mxu0 %v1668_v9  ;;  %108 = vmatpush.msra.mxu1 %v1673_v10  ;;  %v1737_v21 = vld [vmem:[%s2944_s1 + $0x128] sm:$0xff]  ;;  %v1745_v22 = vld [vmem:[%s2944_s1 + $0x138] sm:$0xff]  ;;  %v1750_v23 = vld [vmem:[%s2944_s1 + $0x1b0] sm:$0xff] }
   0x9   :  { %148 = vmatpush.msra.mxu3 %v1680_v11  ;;  %v1756_v24 = vld [vmem:[%s2944_s1 + $0x100] sm:$0xff]  ;;  %v1761_v25 = vld [vmem:[%s2944_s1 + $0x108] sm:$0xff]  ;;  %126 = vmatpush.msra.mxu2 %v1726_v19  ;;  %v1769_v26 = vld [vmem:[%s2944_s1 + $0x118] sm:$0xff] }
   0xa   :  { %89 = vmatpush.msra.mxu0 %v1686_v12  ;;  %109 = vmatpush.msra.mxu1 %v1691_v13  ;;  %v1774_v27 = vld [vmem:[%s2944_s1 + $0x190] sm:$0xff]  ;;  %v1780_v28 = vld [vmem:[%s2944_s1 + $0xe0] sm:$0xff]  ;;  %v1785_v29 = vld [vmem:[%s2944_s1 + $0xe8] sm:$0xff] }
   0xb   :  { %149 = vmatpush.msra.mxu3 %v1698_v14  ;;  %127 = vmatpush.msra.mxu2 %v1750_v23  ;;  %v1793_v30 = vld [vmem:[%s2944_s1 + $0xf8] sm:$0xff]  ;;  %v1798_v31 = vld [vmem:[%s2944_s1 + $0x170] sm:$0xff]  ;;  %v1804_v32 = vld [vmem:[%s2944_s1 + $0xc0] sm:$0xff] }
   0xc   :  { %90 = vmatpush.msra.mxu0 %v1704_v15  ;;  %110 = vmatpush.msra.mxu1 %v1709_v16  ;;  %v1809_v33 = vld [vmem:[%s2944_s1 + $0xc8] sm:$0xff]  ;;  %v1817_v34 = vld [vmem:[%s2944_s1 + $0xd8] sm:$0xff]  ;;  %v1822_v35 = vld [vmem:[%s2944_s1 + $0x150] sm:$0xff] }
   0xd   :  { %150 = vmatpush.msra.mxu3 %v1721_v18  ;;  %128 = vmatpush.msra.mxu2 %v1774_v27  ;;  %3056 = vst [vmem:[#allocation3_spill] sm:$0xff] %v1817_v34  ;;  %v1828_v36 = vld [vmem:[%s2944_s1 + $0xa0] sm:$0xff]  ;;  %v1833_v37 = vld [vmem:[%s2944_s1 + $0xa8] sm:$0xff]  ;;  %v1841_v38 = vld [vmem:[%s2944_s1 + $0xb8] sm:$0xff] }
   0xe   :  { %91 = vmatpush.msra.mxu0 %v1732_v20  ;;  %111 = vmatpush.msra.mxu1 %v1737_v21  ;;  %3057 = vst [vmem:[#allocation4_spill] sm:$0xff] %v1828_v36  ;;  %v1846_v39 = vld [vmem:[%s2944_s1 + $0x130] sm:$0xff]  ;;  %v1852_v40 = vld [vmem:[%s2944_s1 + $0x80] sm:$0xff]  ;;  %v1857_v41 = vld [vmem:[%s2944_s1 + $0x88] sm:$0xff] }
   0xf   :  { %151 = vmatpush.msra.mxu3 %v1745_v22  ;;  %3058 = vst [vmem:[#allocation5_spill] sm:$0xff] %v1833_v37  ;;  %129 = vmatpush.msra.mxu2 %v1798_v31  ;;  %v1865_v42 = vld [vmem:[%s2944_s1 + $0x98] sm:$0xff]  ;;  %v1870_v43 = vld [vmem:[%s2944_s1 + $0x110] sm:$0xff]  ;;  %v1876_v44 = vld [vmem:[%s2944_s1 + $0x60] sm:$0xff] }
  0x10   :  { %92 = vmatpush.msra.mxu0 %v1756_v24  ;;  %112 = vmatpush.msra.mxu1 %v1761_v25  ;;  %3059 = vst [vmem:[#allocation6_spill] sm:$0xff] %v1841_v38  ;;  %v1881_v45 = vld [vmem:[%s2944_s1 + $0x68] sm:$0xff]  ;;  %v1889_v46 = vld [vmem:[%s2944_s1 + $0x78] sm:$0xff]  ;;  %v1894_v47 = vld [vmem:[%s2944_s1 + $0xf0] sm:$0xff] }
  0x11   :  { %152 = vmatpush.msra.mxu3 %v1769_v26  ;;  %3060 = vst [vmem:[#allocation7_spill] sm:$0xff] %v1852_v40  ;;  %130 = vmatpush.msra.mxu2 %v1822_v35  ;;  %v1900_v48 = vld [vmem:[%s2944_s1 + $0x40] sm:$0xff]  ;;  %v1905_v49 = vld [vmem:[%s2944_s1 + $0x48] sm:$0xff]  ;;  %v1913_v50 = vld [vmem:[%s2944_s1 + $0x58] sm:$0xff] }
  0x12   :  { %93 = vmatpush.msra.mxu0 %v1780_v28  ;;  %113 = vmatpush.msra.mxu1 %v1785_v29  ;;  %3061 = vst [vmem:[#allocation8_spill] sm:$0xff] %v1857_v41  ;;  %v1918_v51 = vld [vmem:[%s2944_s1 + $0xd0] sm:$0xff]  ;;  %v1924_v52 = vld [vmem:[%s2944_s1 + $0x20] sm:$0xff]  ;;  %v1929_v53 = vld [vmem:[%s2944_s1 + $0x28] sm:$0xff] }
  0x13   :  { %153 = vmatpush.msra.mxu3 %v1793_v30  ;;  %3062 = vst [vmem:[#allocation9_spill] sm:$0xff] %v1865_v42  ;;  %131 = vmatpush.msra.mxu2 %v1846_v39  ;;  %v1937_v54 = vld [vmem:[%s2944_s1 + $0x38] sm:$0xff]  ;;  %v1942_v55 = vld [vmem:[%s2944_s1 + $0xb0] sm:$0xff]  ;;  %v1948_v56 = vld [vmem:[%s2944_s1] sm:$0xff] }
  0x14   :  { %94 = vmatpush.msra.mxu0 %v1804_v32  ;;  %114 = vmatpush.msra.mxu1 %v1809_v33  ;;  %3063 = vst [vmem:[#allocation10_spill] sm:$0xff] %v1876_v44  ;;  %v1953_v57 = vld [vmem:[%s2944_s1 + $0x8] sm:$0xff]  ;;  %v1961_v58 = vld [vmem:[%s2944_s1 + $0x18] sm:$0xff]  ;;  %v1970_v59 = vld [vmem:[%s2944_s1 + $0x90] sm:$0xff] }
  0x15   :  { %154 = vmatpush.msra.mxu3 %v1817_v34  ;;  %3064 = vst [vmem:[#allocation11_spill] sm:$0xff] %v1881_v45  ;;  %132 = vmatpush.msra.mxu2 %v1870_v43  ;;  %v1976_v61 = vld [vmem:[%s2944_s1 + $0x70] sm:$0xff] }
  0x16   :  { %95 = vmatpush.msra.mxu0 %v1828_v36  ;;  %115 = vmatpush.msra.mxu1 %v1833_v37  ;;  %3065 = vst [vmem:[#allocation12_spill] sm:$0xff] %v1889_v46  ;;  %v1983_v62 = vld [vmem:[%s2944_s1 + $0x50] sm:$0xff] }
  0x17   :  { %155 = vmatpush.msra.mxu3 %v1841_v38  ;;  %3066 = vst [vmem:[#allocation13_spill] sm:$0xff] %v1900_v48  ;;  %133 = vmatpush.msra.mxu2 %v1894_v47  ;;  %v1992_v63 = vld [vmem:[%s2944_s1 + $0x30] sm:$0xff] }
  0x18   :  { %96 = vmatpush.msra.mxu0 %v1852_v40  ;;  %116 = vmatpush.msra.mxu1 %v1857_v41  ;;  %3067 = vst [vmem:[#allocation14_spill] sm:$0xff] %v1905_v49 }
  0x19   :  { %156 = vmatpush.msra.mxu3 %v1865_v42  ;;  %3068 = vst [vmem:[#allocation15_spill] sm:$0xff] %v1913_v50  ;;  %134 = vmatpush.msra.mxu2 %v1918_v51 }
  0x1a   :  { %97 = vmatpush.msra.mxu0 %v1876_v44  ;;  %117 = vmatpush.msra.mxu1 %v1881_v45  ;;  %3069 = vst [vmem:[#allocation16_spill] sm:$0xff] %v1918_v51 }
  0x1b   :  { %157 = vmatpush.msra.mxu3 %v1889_v46  ;;  %3070 = vst [vmem:[#allocation17_spill] sm:$0xff] %v1924_v52  ;;  %135 = vmatpush.msra.mxu2 %v1942_v55 }
  0x1c   :  { %3071 = vst [vmem:[#allocation18_spill] sm:$0xff] %v1929_v53  ;;  %98 = vmatpush.msra.mxu0 %v1900_v48  ;;  %118 = vmatpush.msra.mxu1 %v1905_v49 }
  0x1d   :  { %3072 = vst [vmem:[#allocation19_spill] sm:$0xff] %v1937_v54  ;;  %158 = vmatpush.msra.mxu3 %v1913_v50  ;;  %136 = vmatpush.msra.mxu2 %v1970_v59 }
  0x1e   :  { %3073 = vst [vmem:[#allocation20_spill] sm:$0xff] %v1942_v55  ;;  %99 = vmatpush.msra.mxu0 %v1924_v52  ;;  %119 = vmatpush.msra.mxu1 %v1929_v53 }
  0x1f   :  { %3074 = vst [vmem:[#allocation21_spill] sm:$0xff] %v1948_v56  ;;  %159 = vmatpush.msra.mxu3 %v1937_v54  ;;  %137 = vmatpush.msra.mxu2 %v1976_v61 }
  0x20   :  { %3075 = vst [vmem:[#allocation22_spill] sm:$0xff] %v1953_v57  ;;  %100 = vmatpush.msra.mxu0 %v1948_v56  ;;  %120 = vmatpush.msra.mxu1 %v1953_v57 }
  0x21   :  { %3076 = vst [vmem:[#allocation23_spill] sm:$0xff] %v1961_v58  ;;  %160 = vmatpush.msra.mxu3 %v1961_v58  ;;  %101 = vmatmul.f32.vlgmr.msra.gmra.mxu0 %v1588_v60 }
  0x22   :  { %3077 = vst [vmem:[#allocation24_spill] sm:$0xff] %v1970_v59  ;;  %121 = vmatmul.f32.vlgmr.msra.gmra.mxu1 %v1588_v60  ;;  %161 = vmatmul.f32.vlgmr.msra.gmra.mxu3 %v1588_v60 }
  0x23   :  { %3078 = vst [vmem:[#allocation25_spill] sm:$0xff] %v1976_v61  ;;  %237 = vmatpush.msrb.mxu0 %v1617_v0  ;;  %257 = vmatpush.msrb.mxu1 %v1622_v1 }
  0x24   :  { %3079 = vst [vmem:[#allocation26_spill] sm:$0xff] %v1983_v62  ;;  %297 = vmatpush.msrb.mxu3 %v1627_v2  ;;  %138 = vmatpush.msra.mxu2 %v1983_v62  ;;  %v2001_v2 = vld [vmem:[%s2944_s1 + $0x10] sm:$0xff] }
  0x25   :  { %238 = vmatpush.msrb.mxu0 %v1634_v3  ;;  %3080 = vst [vmem:[#allocation27_spill] sm:$0xff] %v1992_v63  ;;  %258 = vmatpush.msrb.mxu1 %v1639_v4 }
  0x26   :  { %298 = vmatpush.msrb.mxu3 %v1644_v5  ;;  %3081 = vst [vmem:[#allocation28_spill] sm:$0xff] %v2001_v2  ;;  %139 = vmatpush.msra.mxu2 %v1992_v63 }
  0x27   :  { %239 = vmatpush.msrb.mxu0 %v1650_v6  ;;  %259 = vmatpush.msrb.mxu1 %v1655_v7 }
  0x28   :  { %299 = vmatpush.msrb.mxu3 %v1662_v8  ;;  %140 = vmatpush.msra.mxu2 %v2001_v2 }
  0x29   :  { %240 = vmatpush.msrb.mxu0 %v1668_v9  ;;  %260 = vmatpush.msrb.mxu1 %v1673_v10 }
  0x2a   :  { %300 = vmatpush.msrb.mxu3 %v1680_v11  ;;  %141 = vmatmul.f32.vlgmr.msra.gmra.mxu2 %v1588_v60  ;;  %v3082_v60 = vld [vmem:[#allocation2_spill] sm:$0xff] }
  0x2b   :  { %241 = vmatpush.msrb.mxu0 %v1686_v12  ;;  %261 = vmatpush.msrb.mxu1 %v1691_v13 }
  0x2c   :  { %277 = vmatpush.msrb.mxu2 %v1714_v17  ;;  %301 = vmatpush.msrb.mxu3 %v1698_v14 }
  0x2d   :  { %242 = vmatpush.msrb.mxu0 %v1704_v15  ;;  %262 = vmatpush.msrb.mxu1 %v1709_v16 }
  0x2e   :  { %278 = vmatpush.msrb.mxu2 %v1726_v19  ;;  %302 = vmatpush.msrb.mxu3 %v1721_v18 }
  0x2f   :  { %243 = vmatpush.msrb.mxu0 %v1732_v20  ;;  %263 = vmatpush.msrb.mxu1 %v1737_v21 }
  0x30   :  { %279 = vmatpush.msrb.mxu2 %v1750_v23  ;;  %303 = vmatpush.msrb.mxu3 %v1745_v22 }
  0x31   :  { %244 = vmatpush.msrb.mxu0 %v1756_v24  ;;  %264 = vmatpush.msrb.mxu1 %v1761_v25 }
  0x32   :  { %280 = vmatpush.msrb.mxu2 %v1774_v27  ;;  %304 = vmatpush.msrb.mxu3 %v1769_v26 }
  0x33   :  { %245 = vmatpush.msrb.mxu0 %v1780_v28  ;;  %265 = vmatpush.msrb.mxu1 %v1785_v29 }
  0x34   :  { %281 = vmatpush.msrb.mxu2 %v1798_v31  ;;  %305 = vmatpush.msrb.mxu3 %v1793_v30 }
  0x35   :  { %246 = vmatpush.msrb.mxu0 %v1804_v32  ;;  %266 = vmatpush.msrb.mxu1 %v1809_v33 }
  0x36   :  { %282 = vmatpush.msrb.mxu2 %v1822_v35  ;;  %306 = vmatpush.msrb.mxu3 %v1817_v34 }
  0x37   :  { %247 = vmatpush.msrb.mxu0 %v1828_v36  ;;  %267 = vmatpush.msrb.mxu1 %v1833_v37 }
  0x38   :  { %283 = vmatpush.msrb.mxu2 %v1846_v39  ;;  %307 = vmatpush.msrb.mxu3 %v1841_v38 }
  0x39   :  { %248 = vmatpush.msrb.mxu0 %v1852_v40  ;;  %268 = vmatpush.msrb.mxu1 %v1857_v41 }
  0x3a   :  { %284 = vmatpush.msrb.mxu2 %v1870_v43  ;;  %308 = vmatpush.msrb.mxu3 %v1865_v42 }
  0x3b   :  { %249 = vmatpush.msrb.mxu0 %v1876_v44  ;;  %269 = vmatpush.msrb.mxu1 %v1881_v45 }
  0x3c   :  { %285 = vmatpush.msrb.mxu2 %v1894_v47  ;;  %309 = vmatpush.msrb.mxu3 %v1889_v46 }
  0x3d   :  { %250 = vmatpush.msrb.mxu0 %v1900_v48  ;;  %270 = vmatpush.msrb.mxu1 %v1905_v49 }
  0x3e   :  { %286 = vmatpush.msrb.mxu2 %v1918_v51  ;;  %310 = vmatpush.msrb.mxu3 %v1913_v50 }
  0x3f   :  { %251 = vmatpush.msrb.mxu0 %v1924_v52  ;;  %271 = vmatpush.msrb.mxu1 %v1929_v53 }
  0x40   :  { %287 = vmatpush.msrb.mxu2 %v1942_v55  ;;  %311 = vmatpush.msrb.mxu3 %v1937_v54 }
  0x41   :  { %252 = vmatpush.msrb.mxu0 %v1948_v56  ;;  %272 = vmatpush.msrb.mxu1 %v1953_v57 }
  0x42   :  { %288 = vmatpush.msrb.mxu2 %v1970_v59  ;;  %312 = vmatpush.msrb.mxu3 %v1961_v58 }
  0x43   :  { %389 = vmatpush.msra.mxu0 %v1617_v0  ;;  %409 = vmatpush.msra.mxu1 %v1622_v1 }
  0x44   :  { %289 = vmatpush.msrb.mxu2 %v1976_v61  ;;  %449 = vmatpush.msra.mxu3 %v3082_v60 }
  0x45   :  { %390 = vmatpush.msra.mxu0 %v1634_v3  ;;  %410 = vmatpush.msra.mxu1 %v1639_v4 }
  0x46   :  { %290 = vmatpush.msrb.mxu2 %v1983_v62  ;;  %450 = vmatpush.msra.mxu3 %v1644_v5 }
  0x47   :  { %391 = vmatpush.msra.mxu0 %v1650_v6  ;;  %411 = vmatpush.msra.mxu1 %v1655_v7 }
  0x48   :  { %291 = vmatpush.msrb.mxu2 %v1992_v63  ;;  %451 = vmatpush.msra.mxu3 %v1662_v8 }
  0x49   :  { %392 = vmatpush.msra.mxu0 %v1668_v9  ;;  %412 = vmatpush.msra.mxu1 %v1673_v10 }
  0x4a   :  { %292 = vmatpush.msrb.mxu2 %v2001_v2  ;;  %452 = vmatpush.msra.mxu3 %v1680_v11 }
  0x4b   :  { %393 = vmatpush.msra.mxu0 %v1686_v12  ;;  %413 = vmatpush.msra.mxu1 %v1691_v13 }
  0x4c   :  { %429 = vmatpush.msra.mxu2 %v1714_v17  ;;  %453 = vmatpush.msra.mxu3 %v1698_v14 }
  0x4d   :  { %394 = vmatpush.msra.mxu0 %v1704_v15  ;;  %414 = vmatpush.msra.mxu1 %v1709_v16 }
  0x4e   :  { %430 = vmatpush.msra.mxu2 %v1726_v19  ;;  %454 = vmatpush.msra.mxu3 %v1721_v18 }
  0x4f   :  { %395 = vmatpush.msra.mxu0 %v1732_v20  ;;  %415 = vmatpush.msra.mxu1 %v1737_v21 }
  0x50   :  { %431 = vmatpush.msra.mxu2 %v1750_v23  ;;  %455 = vmatpush.msra.mxu3 %v1745_v22 }
  0x51   :  { %396 = vmatpush.msra.mxu0 %v1756_v24  ;;  %416 = vmatpush.msra.mxu1 %v1761_v25 }
  0x52   :  { %432 = vmatpush.msra.mxu2 %v1774_v27  ;;  %456 = vmatpush.msra.mxu3 %v1769_v26 }
  0x53   :  { %397 = vmatpush.msra.mxu0 %v1780_v28  ;;  %417 = vmatpush.msra.mxu1 %v1785_v29 }
  0x54   :  { %433 = vmatpush.msra.mxu2 %v1798_v31  ;;  %457 = vmatpush.msra.mxu3 %v1793_v30 }
  0x55   :  { %398 = vmatpush.msra.mxu0 %v1804_v32  ;;  %418 = vmatpush.msra.mxu1 %v1809_v33 }
  0x56   :  { %434 = vmatpush.msra.mxu2 %v1822_v35  ;;  %458 = vmatpush.msra.mxu3 %v1817_v34 }
  0x57   :  { %399 = vmatpush.msra.mxu0 %v1828_v36  ;;  %419 = vmatpush.msra.mxu1 %v1833_v37 }
  0x58   :  { %435 = vmatpush.msra.mxu2 %v1846_v39  ;;  %459 = vmatpush.msra.mxu3 %v1841_v38 }
  0x59   :  { %400 = vmatpush.msra.mxu0 %v1852_v40  ;;  %420 = vmatpush.msra.mxu1 %v1857_v41 }
  0x5a   :  { %436 = vmatpush.msra.mxu2 %v1870_v43  ;;  %460 = vmatpush.msra.mxu3 %v1865_v42 }
  0x5b   :  { %401 = vmatpush.msra.mxu0 %v1876_v44  ;;  %421 = vmatpush.msra.mxu1 %v1881_v45 }
  0x5c   :  { %437 = vmatpush.msra.mxu2 %v1894_v47  ;;  %461 = vmatpush.msra.mxu3 %v1889_v46 }
  0x5d   :  { %402 = vmatpush.msra.mxu0 %v1900_v48  ;;  %422 = vmatpush.msra.mxu1 %v1905_v49 }
  0x5e   :  { %438 = vmatpush.msra.mxu2 %v1918_v51  ;;  %462 = vmatpush.msra.mxu3 %v1913_v50 }
  0x5f   :  { %403 = vmatpush.msra.mxu0 %v1924_v52  ;;  %423 = vmatpush.msra.mxu1 %v1929_v53 }
  0x60   :  { %439 = vmatpush.msra.mxu2 %v1942_v55  ;;  %463 = vmatpush.msra.mxu3 %v1937_v54  ;;  %v81_v54 = vld [vmem:[%s2945_s0] sm:$0xff] }
  0x61   :  { %404 = vmatpush.msra.mxu0 %v1948_v56  ;;  %424 = vmatpush.msra.mxu1 %v1953_v57  ;;  %v82_v56 = vld [vmem:[%s2945_s0 + $0x8] sm:$0xff] }
  0x62   :  { %440 = vmatpush.msra.mxu2 %v1970_v59  ;;  %464 = vmatpush.msra.mxu3 %v1961_v58 }
  0x64   :  { %441 = vmatpush.msra.mxu2 %v1976_v61 }
  0x66   :  { %442 = vmatpush.msra.mxu2 %v1983_v62 }
  0x68   :  { %443 = vmatpush.msra.mxu2 %v1992_v63  ;;  %v84_v63 = vld [vmem:[%s2945_s0 + $0x18] sm:$0xff] }
  0x6a   :  { %444 = vmatpush.msra.mxu2 %v2001_v2 }
  0x9e   :  { %v102_v53 = vpop.f32.mrf.mxu0 }
  0x9f   :  { %v165_v57 = vadd.f32 %v102_v53, %v81_v54  ;;  %v122_v52 = vpop.f32.mrf.mxu1 }
  0xa0   :  { %v166_v58 = vadd.f32 %v122_v52, %v82_v56  ;;  %v83_v52 = vld [vmem:[%s2945_s0 + $0x10] sm:$0xff] }
  0xa1   :  { %v1342_v50 = vmul.f32 -1.442695, %v165_v57 }
  0xa2   :  { %v1343_v49 = vmul.f32 -1.442695, %v166_v58 }
  0xa3   :  { %1396 = vpow2.f32 %v1342_v50 }
  0xa4   :  { %1398 = vpow2.f32 %v1343_v49 }
  0xa5   :  { %v162_v2 = vpop.f32.mrf.mxu3 }
  0xa6   :  { %v168_v62 = vadd.f32 %v162_v2, %v84_v63 }
  0xa8   :  { %v1344_v48 = vmul.f32 -1.442695, %v168_v62 }
  0xa9   :  { %v1397_v46 = vpop.eup %1396 }
  0xaa   :  { %v1399_v61 = vpop.eup %1398  ;;  %v172_v45 = vadd.f32 1.0, %v1397_v46  ;;  %1400 = vpow2.f32 %v1344_v48 }
  0xab   :  { %v191_v44 = vadd.f32 1.0, %v1399_v61 }
  0xac   :  { %1402 = vrcp.f32 %v172_v45  ;;  %v184_v48 = vand.u32 2147483648, %v172_v45  ;;  %v182_v42 = vand.u32 2147483647, %v172_v45  ;;  %vm178_vm2 = vweird.f32 %v172_v45 }
  0xad   :  { %1404 = vrcp.f32 %v191_v44  ;;  %v142_v50 = vpop.f32.mrf.mxu2  ;;  %v203_v61 = vand.u32 2147483648, %v191_v44  ;;  %v201_v41 = vand.u32 2147483647, %v191_v44  ;;  %vm197_vm3 = vweird.f32 %v191_v44 }
  0xae   :  { %v167_v54 = vadd.f32 %v142_v50, %v83_v52  ;;  %vm183_vm5 = vcmp.eq.f32.partialorder %v182_v42, 8.507059e+37 }
  0xaf   :  { %vm202_vm7 = vcmp.eq.f32.partialorder %v201_v41, 8.507059e+37 }
  0xb0   :  { %v1401_v53 = vpop.eup %1400 }
  0xb1   :  { %v211_v56 = vadd.f32 1.0, %v1401_v53  ;;  %v185_v53 = vor.u32 1.1754944e-38, %v184_v48  ;;  %v3090_v48 = vld [vmem:[#allocation8_spill] sm:$0xff] }
  0xb2   :  { %v1403_v57 = vpop.eup %1402 }
  0xb3   :  { %v1405_v49 = vpop.eup %1404  ;;  %v174_v58 = vmul.f32 %v1403_v57, %v172_v45  ;;  %1406 = vrcp.f32 %v211_v56  ;;  %vm179_vm0 = vweird.f32 %v1403_v57  ;;  %vm217_vm9 = vweird.f32 %v211_v56 }
  0xb4   :  { %v193_v2 = vmul.f32 %v1405_v49, %v191_v44  ;;  %1408 = vtanh.f32 %v167_v54  ;;  %vm198_vm1 = vweird.f32 %v1405_v49  ;;  %vm180_vm4 = vmor %vm178_vm2, %vm179_vm0  ;;  %v204_v54 = vor.u32 1.1754944e-38, %v203_v61  ;;  %v3091_v61 = vld [vmem:[#allocation24_spill] sm:$0xff] }
  0xb5   :  { %v175_v62 = vsub.f32 1.0, %v174_v58  ;;  %vm199_vm6 = vmor %vm197_vm3, %vm198_vm1  ;;  %v223_v44 = vand.u32 2147483648, %v211_v56 }
  0xb6   :  { %v194_v46 = vsub.f32 1.0, %v193_v2 }
  0xb7   :  { %v176_v63 = vmul.f32 %v1403_v57, %v175_v62  ;;  %v224_v42 = vor.u32 1.1754944e-38, %v223_v44  ;;  %v3101_v44 = vld [vmem:[#allocation17_spill] sm:$0xff] }
  0xb8   :  { %v195_v59 = vmul.f32 %v1405_v49, %v194_v46 }
  0xb9   :  { %v1407_v40 = vpop.eup %1406  ;;  %v177_v38 = vadd.f32 %v1403_v57, %v176_v63 }
  0xba   :  { %v1409_v52 = vpop.eup %1408  ;;  %v213_v50 = vmul.f32 %v1407_v40, %v211_v56  ;;  %v196_v55 = vadd.f32 %v1405_v49, %v195_v59  ;;  %vm218_vm8 = vweird.f32 %v1407_v40  ;;  %v221_v59 = vand.u32 2147483647, %v211_v56  ;;  %v3088_v56 = vld [vmem:[#allocation6_spill] sm:$0xff] }
  0xbb   :  { %v181_v58 = vsel %vm180_vm4, %v1403_v57, %v177_v38  ;;  %vm219_vm10 = vmor %vm217_vm9, %vm218_vm8 }
  0xbc   :  { %v214_v2 = vsub.f32 1.0, %v213_v50  ;;  %v186_v62 = vsel %vm183_vm5, %v185_v53, %v181_v58  ;;  %v200_v37 = vsel %vm199_vm6, %v1405_v49, %v196_v55  ;;  %vm222_vm11 = vcmp.eq.f32.partialorder %v221_v59, 8.507059e+37  ;;  %v3089_v49 = vld [vmem:[#allocation7_spill] sm:$0xff]  ;;  %v3093_v50 = vld [vmem:[#allocation10_spill] sm:$0xff]  ;;  %v3096_v58 = vld [vmem:[#allocation12_spill] sm:$0xff] }
  0xbd   :  { %v205_v46 = vsel %vm202_vm7, %v204_v54, %v200_v37  ;;  %v228_v36 = vmul.f32 %v1409_v52, %v186_v62  ;;  %v3085_v37 = vld [vmem:[#allocation4_spill] sm:$0xff]  ;;  %v3092_v52 = vld [vmem:[#allocation9_spill] sm:$0xff]  ;;  %v3094_v53 = vld [vmem:[#allocation11_spill] sm:$0xff] }
  0xbe   :  { %v227_v34 = vmul.f32 0.0, %v205_v46  ;;  %v215_v51 = vmul.f32 %v1407_v40, %v214_v2  ;;  %v3095_v54 = vld [vmem:[#allocation25_spill] sm:$0xff]  ;;  %v3098_v62 = vld [vmem:[#allocation14_spill] sm:$0xff] }
  0xbf   :  { %v3097_v2 = vld [vmem:[#allocation13_spill] sm:$0xff]  ;;  %v3099_v46 = vld [vmem:[#allocation26_spill] sm:$0xff] }
  0xc0   :  { %v2138_v63 = vadd.f32 %v228_v36, %v227_v34  ;;  %v216_v45 = vadd.f32 %v1407_v40, %v215_v51  ;;  %v3083_v34 = vld [vmem:[#allocation16_spill] sm:$0xff]  ;;  %v3084_v36 = vld [vmem:[#allocation3_spill] sm:$0xff]  ;;  %v3102_v59 = vld [vmem:[#allocation18_spill] sm:$0xff] }
  0xc1   :  { %v3087_v51 = vld [vmem:[#allocation20_spill] sm:$0xff] }
  0xc2   :  { %1410 = vtanh.f32 %v2138_v63  ;;  %v220_v38 = vsel %vm219_vm10, %v1407_v40, %v216_v45  ;;  %v3086_v40 = vld [vmem:[#allocation5_spill] sm:$0xff]  ;;  %v3100_v45 = vld [vmem:[#allocation15_spill] sm:$0xff] }
  0xc3   :  { %v225_v55 = vsel %vm222_vm11, %v224_v42, %v220_v38  ;;  %v3103_v38 = vld [vmem:[#allocation27_spill] sm:$0xff] }
  0xc4   :  { %v3104_v42 = vld [vmem:[#allocation19_spill] sm:$0xff] }
  0xc8   :  { %v1411_v57 = vpop.eup %1410 }
  0xc9   :  { %v231_v41 = vmul.f32 %v1411_v57, %v225_v55  ;;  %v3105_v57 = vld [vmem:[#allocation21_spill] sm:$0xff]  ;;  %v3106_v55 = vld [vmem:[#allocation22_spill] sm:$0xff] }
  0xcb   :  { %253 = vmatmul.f32.vlgmr.msrb.gmra.mxu0 %v231_v41  ;;  %273 = vmatmul.f32.vlgmr.msrb.gmra.mxu1 %v231_v41 }
  0xcc   :  { %293 = vmatmul.f32.vlgmr.msrb.gmra.mxu2 %v231_v41  ;;  %313 = vmatmul.f32.vlgmr.msrb.gmra.mxu3 %v231_v41  ;;  %v3107_v41 = vld [vmem:[#allocation28_spill] sm:$0xff] }
  0xcd   :  { %541 = vmatpush.msrb.mxu0 %v1617_v0  ;;  %561 = vmatpush.msrb.mxu1 %v1622_v1 }
  0xce   :  { %581 = vmatpush.msrb.mxu2 %v1714_v17  ;;  %601 = vmatpush.msrb.mxu3 %v3082_v60 }
  0xcf   :  { %542 = vmatpush.msrb.mxu0 %v1634_v3  ;;  %562 = vmatpush.msrb.mxu1 %v1639_v4 }
  0xd0   :  { %582 = vmatpush.msrb.mxu2 %v1726_v19  ;;  %602 = vmatpush.msrb.mxu3 %v1644_v5 }
  0xd1   :  { %543 = vmatpush.msrb.mxu0 %v1650_v6  ;;  %563 = vmatpush.msrb.mxu1 %v1655_v7 }
  0xd2   :  { %583 = vmatpush.msrb.mxu2 %v1750_v23  ;;  %603 = vmatpush.msrb.mxu3 %v1662_v8 }
  0xd3   :  { %544 = vmatpush.msrb.mxu0 %v1668_v9  ;;  %564 = vmatpush.msrb.mxu1 %v1673_v10 }
  0xd4   :  { %584 = vmatpush.msrb.mxu2 %v1774_v27  ;;  %604 = vmatpush.msrb.mxu3 %v1680_v11 }
  0xd5   :  { %545 = vmatpush.msrb.mxu0 %v1686_v12  ;;  %565 = vmatpush.msrb.mxu1 %v1691_v13 }
  0xd6   :  { %585 = vmatpush.msrb.mxu2 %v1798_v31  ;;  %605 = vmatpush.msrb.mxu3 %v1698_v14 }
  0xd7   :  { %546 = vmatpush.msrb.mxu0 %v1704_v15  ;;  %566 = vmatpush.msrb.mxu1 %v1709_v16 }
  0xd8   :  { %586 = vmatpush.msrb.mxu2 %v1822_v35  ;;  %606 = vmatpush.msrb.mxu3 %v1721_v18 }
  0xd9   :  { %547 = vmatpush.msrb.mxu0 %v1732_v20  ;;  %567 = vmatpush.msrb.mxu1 %v1737_v21 }
  0xda   :  { %587 = vmatpush.msrb.mxu2 %v1846_v39  ;;  %607 = vmatpush.msrb.mxu3 %v1745_v22 }
  0xdb   :  { %548 = vmatpush.msrb.mxu0 %v1756_v24  ;;  %568 = vmatpush.msrb.mxu1 %v1761_v25 }
  0xdc   :  { %588 = vmatpush.msrb.mxu2 %v1870_v43  ;;  %608 = vmatpush.msrb.mxu3 %v1769_v26 }
  0xdd   :  { %549 = vmatpush.msrb.mxu0 %v1780_v28  ;;  %569 = vmatpush.msrb.mxu1 %v1785_v29 }
  0xde   :  { %589 = vmatpush.msrb.mxu2 %v1894_v47  ;;  %609 = vmatpush.msrb.mxu3 %v1793_v30 }
  0xdf   :  { %550 = vmatpush.msrb.mxu0 %v1804_v32  ;;  %570 = vmatpush.msrb.mxu1 %v1809_v33 }
  0xe0   :  { %590 = vmatpush.msrb.mxu2 %v3083_v34  ;;  %610 = vmatpush.msrb.mxu3 %v3084_v36 }
  0xe1   :  { %551 = vmatpush.msrb.mxu0 %v3085_v37  ;;  %571 = vmatpush.msrb.mxu1 %v3086_v40 }
  0xe2   :  { %591 = vmatpush.msrb.mxu2 %v3087_v51  ;;  %611 = vmatpush.msrb.mxu3 %v3088_v56 }
  0xe3   :  { %552 = vmatpush.msrb.mxu0 %v3089_v49  ;;  %572 = vmatpush.msrb.mxu1 %v3090_v48 }
  0xe4   :  { %592 = vmatpush.msrb.mxu2 %v3091_v61  ;;  %612 = vmatpush.msrb.mxu3 %v3092_v52 }
  0xe5   :  { %553 = vmatpush.msrb.mxu0 %v3093_v50  ;;  %573 = vmatpush.msrb.mxu1 %v3094_v53 }
  0xe6   :  { %593 = vmatpush.msrb.mxu2 %v3095_v54  ;;  %613 = vmatpush.msrb.mxu3 %v3096_v58 }
  0xe7   :  { %554 = vmatpush.msrb.mxu0 %v3097_v2  ;;  %574 = vmatpush.msrb.mxu1 %v3098_v62  ;;  %v3108_v2 = vld [vmem:[#allocation23_spill] sm:$0xff] }
  0xe8   :  { %594 = vmatpush.msrb.mxu2 %v3099_v46  ;;  %614 = vmatpush.msrb.mxu3 %v3100_v45  ;;  %v1345_v45 = vld [vmem:[%s2945_s0 + $0x20] sm:$0xff] }
  0xe9   :  { %555 = vmatpush.msrb.mxu0 %v3101_v44  ;;  %575 = vmatpush.msrb.mxu1 %v3102_v59  ;;  %v1346_v59 = vld [vmem:[%s2945_s0 + $0x28] sm:$0xff] }
  0xea   :  { %595 = vmatpush.msrb.mxu2 %v3103_v38  ;;  %615 = vmatpush.msrb.mxu3 %v3104_v42 }
  0xeb   :  { %556 = vmatpush.msrb.mxu0 %v3105_v57  ;;  %576 = vmatpush.msrb.mxu1 %v3106_v55 }
  0xec   :  { %596 = vmatpush.msrb.mxu2 %v3107_v41  ;;  %616 = vmatpush.msrb.mxu3 %v3108_v2  ;;  %v1348_v41 = vld [vmem:[%s2945_s0 + $0x38] sm:$0xff] }
 0x148   :  { %v254_v44 = vpop.f32.mrf.mxu0  ;;  %v274_v38 = vpop.f32.mrf.mxu1 }
 0x149   :  { %v317_v46 = vadd.f32 %v1345_v45, %v254_v44  ;;  %v318_v42 = vadd.f32 %v1346_v59, %v274_v38 }
 0x14b   :  { %v1349_v62 = vmul.f32 -1.442695, %v317_v46  ;;  %v1350_v57 = vmul.f32 -1.442695, %v318_v42  ;;  %v1347_v46 = vld [vmem:[%s2945_s0 + $0x30] sm:$0xff] }
 0x14d   :  { %1412 = vpow2.f32 %v1349_v62 }
 0x14e   :  { %1414 = vpow2.f32 %v1350_v57 }
 0x14f   :  { %v314_v2 = vpop.f32.mrf.mxu3  ;;  %v294_v62 = vpop.f32.mrf.mxu2 }
 0x150   :  { %v320_v55 = vadd.f32 %v1348_v41, %v314_v2  ;;  %v319_v38 = vadd.f32 %v1347_v46, %v294_v62 }
 0x152   :  { %v1351_v58 = vmul.f32 -1.442695, %v320_v55 }
 0x153   :  { %v1413_v54 = vpop.eup %1412 }
 0x154   :  { %v1415_v53 = vpop.eup %1414  ;;  %v324_v50 = vadd.f32 1.0, %v1413_v54  ;;  %1416 = vpow2.f32 %v1351_v58 }
 0x155   :  { %v343_v52 = vadd.f32 1.0, %v1415_v53 }
 0x156   :  { %1418 = vrcp.f32 %v324_v50  ;;  %v336_v54 = vand.u32 2147483648, %v324_v50  ;;  %v334_v61 = vand.u32 2147483647, %v324_v50  ;;  %vm330_vm14 = vweird.f32 %v324_v50 }
 0x157   :  { %1420 = vrcp.f32 %v343_v52  ;;  %v355_v53 = vand.u32 2147483648, %v343_v52  ;;  %v353_v49 = vand.u32 2147483647, %v343_v52  ;;  %vm349_vm15 = vweird.f32 %v343_v52 }
 0x158   :  { %v337_v46 = vor.u32 1.1754944e-38, %v336_v54  ;;  %vm335_vm2 = vcmp.eq.f32.partialorder %v334_v61, 8.507059e+37 }
 0x159   :  { %vm354_vm3 = vcmp.eq.f32.partialorder %v353_v49, 8.507059e+37 }
 0x15a   :  { %v1417_v45 = vpop.eup %1416 }
 0x15b   :  { %v363_v44 = vadd.f32 1.0, %v1417_v45 }
 0x15c   :  { %v1419_v59 = vpop.eup %1418 }
 0x15d   :  { %v1421_v42 = vpop.eup %1420  ;;  %v326_v57 = vmul.f32 %v1419_v59, %v324_v50  ;;  %1422 = vrcp.f32 %v363_v44  ;;  %vm331_vm12 = vweird.f32 %v1419_v59  ;;  %vm369_vm5 = vweird.f32 %v363_v44 }
 0x15e   :  { %v345_v2 = vmul.f32 %v1421_v42, %v343_v52  ;;  %1424 = vtanh.f32 %v319_v38  ;;  %vm350_vm13 = vweird.f32 %v1421_v42  ;;  %vm332_vm0 = vmor %vm330_vm14, %vm331_vm12 }
 0x15f   :  { %v327_v55 = vsub.f32 1.0, %v326_v57  ;;  %vm351_vm1 = vmor %vm349_vm15, %vm350_vm13  ;;  %v356_v57 = vor.u32 1.1754944e-38, %v355_v53 }
 0x160   :  { %v346_v41 = vsub.f32 1.0, %v345_v2 }
 0x161   :  { %v328_v58 = vmul.f32 %v1419_v59, %v327_v55 }
 0x162   :  { %v347_v48 = vmul.f32 %v1421_v42, %v346_v41 }
 0x163   :  { %v1423_v56 = vpop.eup %1422  ;;  %v329_v51 = vadd.f32 %v1419_v59, %v328_v58 }
 0x164   :  { %v348_v62 = vadd.f32 %v1421_v42, %v347_v48  ;;  %v365_v45 = vmul.f32 %v1423_v56, %v363_v44  ;;  %v1425_v38 = vpop.eup %1424  ;;  %vm370_vm4 = vweird.f32 %v1423_v56  ;;  %v375_v48 = vand.u32 2147483648, %v363_v44 }
 0x165   :  { %v333_v2 = vsel %vm332_vm0, %v1419_v59, %v329_v51  ;;  %v373_v51 = vand.u32 2147483647, %v363_v44  ;;  %vm371_vm6 = vmor %vm369_vm5, %vm370_vm4 }
 0x166   :  { %v338_v40 = vsel %vm335_vm2, %v337_v46, %v333_v2  ;;  %v352_v55 = vsel %vm351_vm1, %v1421_v42, %v348_v62  ;;  %v366_v37 = vsub.f32 1.0, %v365_v45  ;;  %v376_v59 = vor.u32 1.1754944e-38, %v375_v48 }
 0x167   :  { %v357_v41 = vsel %vm354_vm3, %v356_v57, %v352_v55  ;;  %v380_v36 = vmul.f32 %v1425_v38, %v338_v40  ;;  %vm374_vm7 = vcmp.eq.f32.partialorder %v373_v51, 8.507059e+37  ;;  %v1354_v40 = vld [vmem:[%s2945_s0 + $0x50] sm:$0xff] }
 0x168   :  { %v379_v34 = vmul.f32 %v357_v41, %v2138_v63  ;;  %v367_v58 = vmul.f32 %v1423_v56, %v366_v37 }
 0x16a   :  { %v2218_v50 = vadd.f32 %v380_v36, %v379_v34  ;;  %v368_v52 = vadd.f32 %v1423_v56, %v367_v58 }
 0x16c   :  { %1426 = vtanh.f32 %v2218_v50  ;;  %v372_v61 = vsel %vm371_vm6, %v1423_v56, %v368_v52 }
 0x16d   :  { %v377_v42 = vsel %vm374_vm7, %v376_v59, %v372_v61 }
 0x172   :  { %v1427_v49 = vpop.eup %1426 }
 0x173   :  { %v383_v54 = vmul.f32 %v1427_v49, %v377_v42 }
 0x175   :  { %405 = vmatmul.f32.vlgmr.msra.gmra.mxu0 %v383_v54  ;;  %425 = vmatmul.f32.vlgmr.msra.gmra.mxu1 %v383_v54 }
 0x176   :  { %445 = vmatmul.f32.vlgmr.msra.gmra.mxu2 %v383_v54  ;;  %465 = vmatmul.f32.vlgmr.msra.gmra.mxu3 %v383_v54 }
 0x177   :  { %693 = vmatpush.msra.mxu0 %v1617_v0  ;;  %713 = vmatpush.msra.mxu1 %v1622_v1  ;;  %v3109_v0 = vld [vmem:[#allocation16_spill] sm:$0xff]  ;;  %v3110_v1 = vld [vmem:[#allocation3_spill] sm:$0xff] }
 0x178   :  { %733 = vmatpush.msra.mxu2 %v1714_v17  ;;  %753 = vmatpush.msra.mxu3 %v3082_v60  ;;  %v3125_v17 = vld [vmem:[#allocation26_spill] sm:$0xff] }
 0x179   :  { %694 = vmatpush.msra.mxu0 %v1634_v3  ;;  %714 = vmatpush.msra.mxu1 %v1639_v4  ;;  %v3111_v3 = vld [vmem:[#allocation4_spill] sm:$0xff]  ;;  %v3112_v4 = vld [vmem:[#allocation5_spill] sm:$0xff] }
 0x17a   :  { %734 = vmatpush.msra.mxu2 %v1726_v19  ;;  %754 = vmatpush.msra.mxu3 %v1644_v5  ;;  %v3113_v5 = vld [vmem:[#allocation20_spill] sm:$0xff]  ;;  %v3127_v19 = vld [vmem:[#allocation17_spill] sm:$0xff] }
 0x17b   :  { %695 = vmatpush.msra.mxu0 %v1650_v6  ;;  %715 = vmatpush.msra.mxu1 %v1655_v7  ;;  %v3114_v6 = vld [vmem:[#allocation6_spill] sm:$0xff]  ;;  %v3115_v7 = vld [vmem:[#allocation7_spill] sm:$0xff] }
 0x17c   :  { %735 = vmatpush.msra.mxu2 %v1750_v23  ;;  %755 = vmatpush.msra.mxu3 %v1662_v8  ;;  %v3116_v8 = vld [vmem:[#allocation8_spill] sm:$0xff]  ;;  %v3131_v23 = vld [vmem:[#allocation21_spill] sm:$0xff] }
 0x17d   :  { %696 = vmatpush.msra.mxu0 %v1668_v9  ;;  %716 = vmatpush.msra.mxu1 %v1673_v10  ;;  %v3117_v9 = vld [vmem:[#allocation24_spill] sm:$0xff]  ;;  %v3118_v10 = vld [vmem:[#allocation9_spill] sm:$0xff] }
 0x17e   :  { %736 = vmatpush.msra.mxu2 %v1774_v27  ;;  %756 = vmatpush.msra.mxu3 %v1680_v11  ;;  %v3119_v11 = vld [vmem:[#allocation10_spill] sm:$0xff] }
 0x17f   :  { %697 = vmatpush.msra.mxu0 %v1686_v12  ;;  %717 = vmatpush.msra.mxu1 %v1691_v13  ;;  %v3120_v12 = vld [vmem:[#allocation11_spill] sm:$0xff]  ;;  %v3121_v13 = vld [vmem:[#allocation25_spill] sm:$0xff]  ;;  %v1352_v27 = vld [vmem:[%s2945_s0 + $0x40] sm:$0xff] }
 0x180   :  { %737 = vmatpush.msra.mxu2 %v1798_v31  ;;  %757 = vmatpush.msra.mxu3 %v1698_v14  ;;  %v3122_v14 = vld [vmem:[#allocation12_spill] sm:$0xff] }
 0x181   :  { %698 = vmatpush.msra.mxu0 %v1704_v15  ;;  %718 = vmatpush.msra.mxu1 %v1709_v16  ;;  %v3123_v15 = vld [vmem:[#allocation13_spill] sm:$0xff]  ;;  %v3124_v16 = vld [vmem:[#allocation14_spill] sm:$0xff] }
 0x182   :  { %738 = vmatpush.msra.mxu2 %v1822_v35  ;;  %758 = vmatpush.msra.mxu3 %v1721_v18  ;;  %v3126_v18 = vld [vmem:[#allocation15_spill] sm:$0xff] }
 0x183   :  { %699 = vmatpush.msra.mxu0 %v1732_v20  ;;  %719 = vmatpush.msra.mxu1 %v1737_v21  ;;  %v3128_v20 = vld [vmem:[#allocation18_spill] sm:$0xff]  ;;  %v3129_v21 = vld [vmem:[#allocation27_spill] sm:$0xff] }
 0x184   :  { %739 = vmatpush.msra.mxu2 %v1846_v39  ;;  %759 = vmatpush.msra.mxu3 %v1745_v22  ;;  %v3130_v22 = vld [vmem:[#allocation19_spill] sm:$0xff]  ;;  %v1355_v39 = vld [vmem:[%s2945_s0 + $0x58] sm:$0xff] }
 0x185   :  { %700 = vmatpush.msra.mxu0 %v1756_v24  ;;  %720 = vmatpush.msra.mxu1 %v1761_v25  ;;  %v3132_v24 = vld [vmem:[#allocation22_spill] sm:$0xff]  ;;  %v3133_v25 = vld [vmem:[#allocation28_spill] sm:$0xff] }
 0x186   :  { %740 = vmatpush.msra.mxu2 %v1870_v43  ;;  %760 = vmatpush.msra.mxu3 %v1769_v26  ;;  %v3134_v26 = vld [vmem:[#allocation23_spill] sm:$0xff] }
 0x187   :  { %701 = vmatpush.msra.mxu0 %v1780_v28  ;;  %721 = vmatpush.msra.mxu1 %v1785_v29  ;;  %v1353_v28 = vld [vmem:[%s2945_s0 + $0x48] sm:$0xff] }
 0x188   :  { %741 = vmatpush.msra.mxu2 %v1894_v47  ;;  %761 = vmatpush.msra.mxu3 %v1793_v30 }
 0x189   :  { %702 = vmatpush.msra.mxu0 %v1804_v32  ;;  %722 = vmatpush.msra.mxu1 %v1809_v33 }
 0x18a   :  { %742 = vmatpush.msra.mxu2 %v3109_v0  ;;  %762 = vmatpush.msra.mxu3 %v3110_v1 }
 0x18b   :  { %703 = vmatpush.msra.mxu0 %v3111_v3  ;;  %723 = vmatpush.msra.mxu1 %v3112_v4 }
 0x18c   :  { %743 = vmatpush.msra.mxu2 %v3113_v5  ;;  %763 = vmatpush.msra.mxu3 %v3114_v6 }
 0x18d   :  { %704 = vmatpush.msra.mxu0 %v3115_v7  ;;  %724 = vmatpush.msra.mxu1 %v3116_v8 }
 0x18e   :  { %744 = vmatpush.msra.mxu2 %v3117_v9  ;;  %764 = vmatpush.msra.mxu3 %v3118_v10 }
 0x18f   :  { %705 = vmatpush.msra.mxu0 %v3119_v11  ;;  %725 = vmatpush.msra.mxu1 %v3120_v12 }
 0x190   :  { %745 = vmatpush.msra.mxu2 %v3121_v13  ;;  %765 = vmatpush.msra.mxu3 %v3122_v14 }
 0x191   :  { %706 = vmatpush.msra.mxu0 %v3123_v15  ;;  %726 = vmatpush.msra.mxu1 %v3124_v16 }
 0x192   :  { %746 = vmatpush.msra.mxu2 %v3125_v17  ;;  %766 = vmatpush.msra.mxu3 %v3126_v18 }
 0x193   :  { %707 = vmatpush.msra.mxu0 %v3127_v19  ;;  %727 = vmatpush.msra.mxu1 %v3128_v20 }
 0x194   :  { %747 = vmatpush.msra.mxu2 %v3129_v21  ;;  %767 = vmatpush.msra.mxu3 %v3130_v22  ;;  %v2310_v21 = vld [vmem:[%s2944_s1 + $0x1e8] sm:$0xff]  ;;  %v2316_v22 = vld [vmem:[%s2944_s1 + $0x1f0] sm:$0xff] }
 0x195   :  { %708 = vmatpush.msra.mxu0 %v3131_v23  ;;  %728 = vmatpush.msra.mxu1 %v3132_v24  ;;  %v2322_v23 = vld [vmem:[%s2944_s1 + $0x1f8] sm:$0xff]  ;;  %v2328_v24 = vld [vmem:[%s2944_s1 + $0x1c0] sm:$0xff] }
 0x196   :  { %748 = vmatpush.msra.mxu2 %v3133_v25  ;;  %768 = vmatpush.msra.mxu3 %v3134_v26  ;;  %v2334_v25 = vld [vmem:[%s2944_s1 + $0x1c8] sm:$0xff]  ;;  %v2340_v26 = vld [vmem:[%s2944_s1 + $0x1d0] sm:$0xff] }
 0x1f2   :  { %v406_v29 = vpop.f32.mrf.mxu0  ;;  %v426_v30 = vpop.f32.mrf.mxu1 }
 0x1f3   :  { %v469_v31 = vadd.f32 %v1352_v27, %v406_v29  ;;  %v470_v32 = vadd.f32 %v1353_v28, %v426_v30  ;;  %v2346_v27 = vld [vmem:[%s2944_s1 + $0x1d8] sm:$0xff]  ;;  %v2352_v28 = vld [vmem:[%s2944_s1 + $0x1a0] sm:$0xff]  ;;  %v2358_v29 = vld [vmem:[%s2944_s1 + $0x1a8] sm:$0xff] }
 0x1f4   :  { %v2364_v30 = vld [vmem:[%s2944_s1 + $0x1b0] sm:$0xff] }
 0x1f5   :  { %v1356_v33 = vmul.f32 -1.442695, %v469_v31  ;;  %v1357_v35 = vmul.f32 -1.442695, %v470_v32  ;;  %v2370_v31 = vld [vmem:[%s2944_s1 + $0x1b8] sm:$0xff]  ;;  %v2376_v32 = vld [vmem:[%s2944_s1 + $0x180] sm:$0xff] }
 0x1f7   :  { %1428 = vpow2.f32 %v1356_v33  ;;  %v2382_v33 = vld [vmem:[%s2944_s1 + $0x188] sm:$0xff] }
 0x1f8   :  { %1430 = vpow2.f32 %v1357_v35  ;;  %v2388_v35 = vld [vmem:[%s2944_s1 + $0x190] sm:$0xff] }
 0x1f9   :  { %v466_v43 = vpop.f32.mrf.mxu3  ;;  %v446_v56 = vpop.f32.mrf.mxu2 }
 0x1fa   :  { %v472_v47 = vadd.f32 %v1355_v39, %v466_v43  ;;  %v471_v62 = vadd.f32 %v1354_v40, %v446_v56  ;;  %v2394_v39 = vld [vmem:[%s2944_s1 + $0x198] sm:$0xff]  ;;  %v2400_v43 = vld [vmem:[%s2944_s1 + $0x160] sm:$0xff] }
 0x1fb   :  { %v2442_v40 = vld [vmem:[%s2944_s1 + $0x158] sm:$0xff]  ;;  %v2448_v56 = vld [vmem:[%s2944_s1 + $0x120] sm:$0xff] }
 0x1fc   :  { %v1358_v60 = vmul.f32 -1.442695, %v472_v47  ;;  %v2406_v47 = vld [vmem:[%s2944_s1 + $0x168] sm:$0xff] }
 0x1fd   :  { %v1429_v63 = vpop.eup %1428 }
 0x1fe   :  { %v1431_v34 = vpop.eup %1430  ;;  %v476_v36 = vadd.f32 1.0, %v1429_v63  ;;  %1432 = vpow2.f32 %v1358_v60  ;;  %v2412_v60 = vld [vmem:[%s2944_s1 + $0x170] sm:$0xff]  ;;  %v2418_v63 = vld [vmem:[%s2944_s1 + $0x178] sm:$0xff] }
 0x1ff   :  { %v495_v37 = vadd.f32 1.0, %v1431_v34  ;;  %v2424_v34 = vld [vmem:[%s2944_s1 + $0x140] sm:$0xff] }
 0x200   :  { %1434 = vrcp.f32 %v476_v36  ;;  %v488_v41 = vand.u32 2147483648, %v476_v36  ;;  %v486_v48 = vand.u32 2147483647, %v476_v36  ;;  %vm482_vm10 = vweird.f32 %v476_v36 }
 0x201   :  { %1436 = vrcp.f32 %v495_v37  ;;  %v507_v58 = vand.u32 2147483648, %v495_v37  ;;  %v505_v61 = vand.u32 2147483647, %v495_v37  ;;  %vm501_vm11 = vweird.f32 %v495_v37 }
 0x202   :  { %v489_v42 = vor.u32 1.1754944e-38, %v488_v41  ;;  %vm487_vm14 = vcmp.eq.f32.partialorder %v486_v48, 8.507059e+37  ;;  %v2508_v41 = vld [vmem:[%s2944_s1 + $0xf0] sm:$0xff]  ;;  %v2526_v48 = vld [vmem:[%s2944_s1 + $0xc8] sm:$0xff] }
 0x203   :  { %v508_v1 = vor.u32 1.1754944e-38, %v507_v58  ;;  %vm506_vm15 = vcmp.eq.f32.partialorder %v505_v61, 8.507059e+37  ;;  %v2514_v58 = vld [vmem:[%s2944_s1 + $0xf8] sm:$0xff] }
 0x204   :  { %v1433_v44 = vpop.eup %1432  ;;  %v2538_v61 = vld [vmem:[%s2944_s1 + $0xd8] sm:$0xff] }
 0x205   :  { %v515_v53 = vadd.f32 1.0, %v1433_v44  ;;  %v2454_v44 = vld [vmem:[%s2944_s1 + $0x128] sm:$0xff]  ;;  %3136 = vst [vmem:[#allocation16_spill] sm:$0xff] %v2538_v61 }
 0x206   :  { %v1435_v46 = vpop.eup %1434 }
 0x207   :  { %v1437_v45 = vpop.eup %1436  ;;  %v478_v57 = vmul.f32 %v1435_v46, %v476_v36  ;;  %1438 = vrcp.f32 %v515_v53  ;;  %vm483_vm8 = vweird.f32 %v1435_v46  ;;  %v527_v14 = vand.u32 2147483648, %v515_v53  ;;  %v2430_v36 = vld [vmem:[%s2944_s1 + $0x148] sm:$0xff] }
 0x208   :  { %v497_v2 = vmul.f32 %v1437_v45, %v495_v37  ;;  %1440 = vtanh.f32 %v471_v62  ;;  %vm502_vm9 = vweird.f32 %v1437_v45  ;;  %vm484_vm12 = vmor %vm482_vm10, %vm483_vm8  ;;  %vm521_vm1 = vweird.f32 %v515_v53  ;;  %v2436_v37 = vld [vmem:[%s2944_s1 + $0x150] sm:$0xff]  ;;  %v2472_v62 = vld [vmem:[%s2944_s1 + $0x100] sm:$0xff] }
 0x209   :  { %v479_v38 = vsub.f32 1.0, %v478_v57  ;;  %vm503_vm13 = vmor %vm501_vm11, %vm502_vm9  ;;  %v525_v15 = vand.u32 2147483647, %v515_v53  ;;  %v528_v17 = vor.u32 1.1754944e-38, %v527_v14  ;;  %v2484_v57 = vld [vmem:[%s2944_s1 + $0x110] sm:$0xff]  ;;  %v2640_v14 = vld [vmem:[%s2944_s1 + $0x20] sm:$0xff] }
 0x20a   :  { %v498_v55 = vsub.f32 1.0, %v497_v2  ;;  %v2490_v2 = vld [vmem:[%s2944_s1 + $0x118] sm:$0xff]  ;;  %3153 = vst [vmem:[#allocation15_spill] sm:$0xff] %v2640_v14 }
 0x20b   :  { %v480_v52 = vmul.f32 %v1435_v46, %v479_v38  ;;  %vm526_vm3 = vcmp.eq.f32.partialorder %v525_v15, 8.507059e+37  ;;  %v2496_v38 = vld [vmem:[%s2944_s1 + $0xe0] sm:$0xff]  ;;  %v2646_v15 = vld [vmem:[%s2944_s1 + $0x28] sm:$0xff] }
 0x20c   :  { %v499_v51 = vmul.f32 %v1437_v45, %v498_v55  ;;  %v2502_v55 = vld [vmem:[%s2944_s1 + $0xe8] sm:$0xff]  ;;  %3154 = vst [vmem:[#allocation17_spill] sm:$0xff] %v2646_v15 }
 0x20d   :  { %v1439_v59 = vpop.eup %1438  ;;  %v481_v49 = vadd.f32 %v1435_v46, %v480_v52  ;;  %v2520_v52 = vld [vmem:[%s2944_s1 + $0xc0] sm:$0xff] }
 0x20e   :  { %v500_v54 = vadd.f32 %v1437_v45, %v499_v51  ;;  %v517_v0 = vmul.f32 %v1439_v59, %v515_v53  ;;  %v1441_v4 = vpop.eup %1440  ;;  %vm522_vm0 = vweird.f32 %v1439_v59  ;;  %v2460_v53 = vld [vmem:[%s2944_s1 + $0x130] sm:$0xff] }
 0x20f   :  { %v485_v3 = vsel %vm484_vm12, %v1435_v46, %v481_v49  ;;  %vm523_vm2 = vmor %vm521_vm1, %vm522_vm0  ;;  %v2466_v46 = vld [vmem:[%s2944_s1 + $0x138] sm:$0xff]  ;;  %v2532_v51 = vld [vmem:[%s2944_s1 + $0xd0] sm:$0xff] }
 0x210   :  { %v490_v5 = vsel %vm487_vm14, %v489_v42, %v485_v3  ;;  %v504_v6 = vsel %vm503_vm13, %v1437_v45, %v500_v54  ;;  %v518_v7 = vsub.f32 1.0, %v517_v0  ;;  %v2478_v45 = vld [vmem:[%s2944_s1 + $0x108] sm:$0xff]  ;;  %3135 = vst [vmem:[#allocation2_spill] sm:$0xff] %v2532_v51  ;;  %v2556_v42 = vld [vmem:[%s2944_s1 + $0xb0] sm:$0xff]  ;;  %v2562_v54 = vld [vmem:[%s2944_s1 + $0xb8] sm:$0xff] }
 0x211   :  { %v509_v8 = vsel %vm506_vm15, %v508_v1, %v504_v6  ;;  %v532_v9 = vmul.f32 %v1441_v4, %v490_v5  ;;  %v2550_v49 = vld [vmem:[%s2944_s1 + $0xa8] sm:$0xff]  ;;  %3139 = vst [vmem:[#allocation5_spill] sm:$0xff] %v2556_v42  ;;  %v2568_v0 = vld [vmem:[%s2944_s1 + $0x80] sm:$0xff]  ;;  %v2580_v3 = vld [vmem:[%s2944_s1 + $0x90] sm:$0xff] }
 0x212   :  { %v531_v10 = vmul.f32 %v509_v8, %v2218_v50  ;;  %v519_v11 = vmul.f32 %v1439_v59, %v518_v7  ;;  %v2304_v50 = vld [vmem:[%s2944_s1 + $0x1e0] sm:$0xff]  ;;  %3138 = vst [vmem:[#allocation4_spill] sm:$0xff] %v2550_v49  ;;  %v2574_v1 = vld [vmem:[%s2944_s1 + $0x88] sm:$0xff]  ;;  %v2586_v4 = vld [vmem:[%s2944_s1 + $0x98] sm:$0xff] }
 0x213   :  { %3140 = vst [vmem:[#allocation20_spill] sm:$0xff] %v2562_v54  ;;  %v2592_v5 = vld [vmem:[%s2944_s1 + $0x60] sm:$0xff]  ;;  %v2598_v6 = vld [vmem:[%s2944_s1 + $0x68] sm:$0xff]  ;;  %v2604_v7 = vld [vmem:[%s2944_s1 + $0x70] sm:$0xff] }
 0x214   :  { %v2298_v12 = vadd.f32 %v532_v9, %v531_v10  ;;  %v520_v13 = vadd.f32 %v1439_v59, %v519_v11  ;;  %3141 = vst [vmem:[#allocation6_spill] sm:$0xff] %v2568_v0  ;;  %v2610_v8 = vld [vmem:[%s2944_s1 + $0x78] sm:$0xff]  ;;  %v2616_v9 = vld [vmem:[%s2944_s1 + $0x40] sm:$0xff]  ;;  %v2622_v10 = vld [vmem:[%s2944_s1 + $0x48] sm:$0xff] }
 0x215   :  { %3142 = vst [vmem:[#allocation7_spill] sm:$0xff] %v2574_v1  ;;  %v2628_v11 = vld [vmem:[%s2944_s1 + $0x50] sm:$0xff] }
 0x216   :  { %1442 = vtanh.f32 %v2298_v12  ;;  %v524_v16 = vsel %vm523_vm2, %v1439_v59, %v520_v13  ;;  %v2544_v59 = vld [vmem:[%s2944_s1 + $0xa0] sm:$0xff]  ;;  %3143 = vst [vmem:[#allocation8_spill] sm:$0xff] %v2580_v3  ;;  %v2634_v13 = vld [vmem:[%s2944_s1 + $0x58] sm:$0xff] }
 0x217   :  { %v529_v19 = vsel %vm526_vm3, %v528_v17, %v524_v16  ;;  %3137 = vst [vmem:[#allocation3_spill] sm:$0xff] %v2544_v59  ;;  %v2652_v16 = vld [vmem:[%s2944_s1 + $0x30] sm:$0xff]  ;;  %v2658_v17 = vld [vmem:[%s2944_s1 + $0x38] sm:$0xff] }
 0x218   :  { %3144 = vst [vmem:[#allocation24_spill] sm:$0xff] %v2586_v4 }
 0x219   :  { %3145 = vst [vmem:[#allocation9_spill] sm:$0xff] %v2592_v5 }
 0x21a   :  { %3146 = vst [vmem:[#allocation10_spill] sm:$0xff] %v2598_v6 }
 0x21b   :  { %3147 = vst [vmem:[#allocation11_spill] sm:$0xff] %v2604_v7 }
 0x21c   :  { %v1443_v18 = vpop.eup %1442  ;;  %3148 = vst [vmem:[#allocation25_spill] sm:$0xff] %v2610_v8 }
 0x21d   :  { %v535_v20 = vmul.f32 %v1443_v18, %v529_v19  ;;  %3149 = vst [vmem:[#allocation12_spill] sm:$0xff] %v2616_v9  ;;  %v2664_v18 = vld [vmem:[%s2944_s1] sm:$0xff]  ;;  %v2670_v19 = vld [vmem:[%s2944_s1 + $0x8] sm:$0xff] }
 0x21e   :  { %3150 = vst [vmem:[#allocation13_spill] sm:$0xff] %v2622_v10 }
 0x21f   :  { %557 = vmatmul.f32.vlgmr.msrb.gmra.mxu0 %v535_v20  ;;  %577 = vmatmul.f32.vlgmr.msrb.gmra.mxu1 %v535_v20  ;;  %3151 = vst [vmem:[#allocation14_spill] sm:$0xff] %v2628_v11 }
 0x220   :  { %597 = vmatmul.f32.vlgmr.msrb.gmra.mxu2 %v535_v20  ;;  %617 = vmatmul.f32.vlgmr.msrb.gmra.mxu3 %v535_v20  ;;  %3152 = vst [vmem:[#allocation26_spill] sm:$0xff] %v2634_v13  ;;  %v2676_v20 = vld [vmem:[%s2944_s1 + $0x10] sm:$0xff] }
 0x221   :  { %845 = vmatpush.msrb.mxu0 %v2304_v50  ;;  %865 = vmatpush.msrb.mxu1 %v2310_v21  ;;  %3155 = vst [vmem:[#allocation18_spill] sm:$0xff] %v2652_v16 }
 0x222   :  { %885 = vmatpush.msrb.mxu2 %v2316_v22  ;;  %905 = vmatpush.msrb.mxu3 %v2322_v23  ;;  %3156 = vst [vmem:[#allocation27_spill] sm:$0xff] %v2658_v17 }
 0x223   :  { %846 = vmatpush.msrb.mxu0 %v2328_v24  ;;  %866 = vmatpush.msrb.mxu1 %v2334_v25  ;;  %3157 = vst [vmem:[#allocation19_spill] sm:$0xff] %v2664_v18 }
 0x224   :  { %886 = vmatpush.msrb.mxu2 %v2340_v26  ;;  %906 = vmatpush.msrb.mxu3 %v2346_v27  ;;  %3158 = vst [vmem:[#allocation21_spill] sm:$0xff] %v2670_v19 }
 0x225   :  { %847 = vmatpush.msrb.mxu0 %v2352_v28  ;;  %867 = vmatpush.msrb.mxu1 %v2358_v29  ;;  %3159 = vst [vmem:[#allocation22_spill] sm:$0xff] %v2676_v20 }
 0x226   :  { %887 = vmatpush.msrb.mxu2 %v2364_v30  ;;  %907 = vmatpush.msrb.mxu3 %v2370_v31 }
 0x227   :  { %848 = vmatpush.msrb.mxu0 %v2376_v32  ;;  %868 = vmatpush.msrb.mxu1 %v2382_v33 }
 0x228   :  { %888 = vmatpush.msrb.mxu2 %v2388_v35  ;;  %908 = vmatpush.msrb.mxu3 %v2394_v39 }
 0x229   :  { %849 = vmatpush.msrb.mxu0 %v2400_v43  ;;  %869 = vmatpush.msrb.mxu1 %v2406_v47 }
 0x22a   :  { %889 = vmatpush.msrb.mxu2 %v2412_v60  ;;  %909 = vmatpush.msrb.mxu3 %v2418_v63 }
 0x22b   :  { %850 = vmatpush.msrb.mxu0 %v2424_v34  ;;  %870 = vmatpush.msrb.mxu1 %v2430_v36 }
 0x22c   :  { %890 = vmatpush.msrb.mxu2 %v2436_v37  ;;  %910 = vmatpush.msrb.mxu3 %v2442_v40 }
 0x22d   :  { %851 = vmatpush.msrb.mxu0 %v2448_v56  ;;  %871 = vmatpush.msrb.mxu1 %v2454_v44 }
 0x22e   :  { %891 = vmatpush.msrb.mxu2 %v2460_v53  ;;  %911 = vmatpush.msrb.mxu3 %v2466_v46 }
 0x22f   :  { %852 = vmatpush.msrb.mxu0 %v2472_v62  ;;  %872 = vmatpush.msrb.mxu1 %v2478_v45 }
 0x230   :  { %892 = vmatpush.msrb.mxu2 %v2484_v57  ;;  %912 = vmatpush.msrb.mxu3 %v2490_v2 }
 0x231   :  { %853 = vmatpush.msrb.mxu0 %v2496_v38  ;;  %873 = vmatpush.msrb.mxu1 %v2502_v55 }
 0x232   :  { %893 = vmatpush.msrb.mxu2 %v2508_v41  ;;  %913 = vmatpush.msrb.mxu3 %v2514_v58 }
 0x233   :  { %854 = vmatpush.msrb.mxu0 %v2520_v52  ;;  %874 = vmatpush.msrb.mxu1 %v2526_v48 }
 0x234   :  { %894 = vmatpush.msrb.mxu2 %v2532_v51  ;;  %914 = vmatpush.msrb.mxu3 %v2538_v61 }
 0x235   :  { %855 = vmatpush.msrb.mxu0 %v2544_v59  ;;  %875 = vmatpush.msrb.mxu1 %v2550_v49 }
 0x236   :  { %895 = vmatpush.msrb.mxu2 %v2556_v42  ;;  %915 = vmatpush.msrb.mxu3 %v2562_v54 }
 0x237   :  { %856 = vmatpush.msrb.mxu0 %v2568_v0  ;;  %876 = vmatpush.msrb.mxu1 %v2574_v1 }
 0x238   :  { %896 = vmatpush.msrb.mxu2 %v2580_v3  ;;  %916 = vmatpush.msrb.mxu3 %v2586_v4 }
 0x239   :  { %857 = vmatpush.msrb.mxu0 %v2592_v5  ;;  %877 = vmatpush.msrb.mxu1 %v2598_v6 }
 0x23a   :  { %897 = vmatpush.msrb.mxu2 %v2604_v7  ;;  %917 = vmatpush.msrb.mxu3 %v2610_v8 }
 0x23b   :  { %858 = vmatpush.msrb.mxu0 %v2616_v9  ;;  %878 = vmatpush.msrb.mxu1 %v2622_v10  ;;  %v1362_v10 = vld [vmem:[%s2945_s0 + $0x78] sm:$0xff] }
 0x23c   :  { %898 = vmatpush.msrb.mxu2 %v2628_v11  ;;  %918 = vmatpush.msrb.mxu3 %v2634_v13 }
 0x23d   :  { %859 = vmatpush.msrb.mxu0 %v2640_v14  ;;  %879 = vmatpush.msrb.mxu1 %v2646_v15 }
 0x23e   :  { %899 = vmatpush.msrb.mxu2 %v2652_v16  ;;  %919 = vmatpush.msrb.mxu3 %v2658_v17  ;;  %v2682_v17 = vld [vmem:[%s2944_s1 + $0x18] sm:$0xff] }
 0x23f   :  { %860 = vmatpush.msrb.mxu0 %v2664_v18  ;;  %880 = vmatpush.msrb.mxu1 %v2670_v19  ;;  %3160 = vst [vmem:[#allocation28_spill] sm:$0xff] %v2682_v17  ;;  %v1359_v18 = vld [vmem:[%s2945_s0 + $0x60] sm:$0xff]  ;;  %v1360_v19 = vld [vmem:[%s2945_s0 + $0x68] sm:$0xff] }
 0x240   :  { %900 = vmatpush.msrb.mxu2 %v2676_v20  ;;  %920 = vmatpush.msrb.mxu3 %v2682_v17 }
 0x29c   :  { %v558_v16 = vpop.f32.mrf.mxu0  ;;  %v578_v15 = vpop.f32.mrf.mxu1 }
 0x29d   :  { %v621_v14 = vadd.f32 %v1359_v18, %v558_v16  ;;  %v622_v13 = vadd.f32 %v1360_v19, %v578_v15 }
 0x29f   :  { %v1363_v20 = vmul.f32 -1.442695, %v621_v14  ;;  %v1364_v11 = vmul.f32 -1.442695, %v622_v13  ;;  %v1361_v13 = vld [vmem:[%s2945_s0 + $0x70] sm:$0xff] }
 0x2a1   :  { %1444 = vpow2.f32 %v1363_v20 }
 0x2a2   :  { %1446 = vpow2.f32 %v1364_v11 }
 0x2a3   :  { %v618_v17 = vpop.f32.mrf.mxu3  ;;  %v598_v14 = vpop.f32.mrf.mxu2 }
 0x2a4   :  { %v624_v9 = vadd.f32 %v1362_v10, %v618_v17  ;;  %v623_v19 = vadd.f32 %v1361_v13, %v598_v14 }
 0x2a6   :  { %v1365_v8 = vmul.f32 -1.442695, %v624_v9 }
 0x2a7   :  { %v1445_v7 = vpop.eup %1444 }
 0x2a8   :  { %v1447_v6 = vpop.eup %1446  ;;  %v628_v5 = vadd.f32 1.0, %v1445_v7  ;;  %1448 = vpow2.f32 %v1365_v8 }
 0x2a9   :  { %v647_v4 = vadd.f32 1.0, %v1447_v6 }
 0x2aa   :  { %1450 = vrcp.f32 %v628_v5  ;;  %v640_v7 = vand.u32 2147483648, %v628_v5  ;;  %v638_v3 = vand.u32 2147483647, %v628_v5  ;;  %vm634_vm6 = vweird.f32 %v628_v5 }
 0x2ab   :  { %1452 = vrcp.f32 %v647_v4  ;;  %v659_v6 = vand.u32 2147483648, %v647_v4  ;;  %v657_v0 = vand.u32 2147483647, %v647_v4  ;;  %vm653_vm7 = vweird.f32 %v647_v4 }
 0x2ac   :  { %v641_v13 = vor.u32 1.1754944e-38, %v640_v7  ;;  %vm639_vm10 = vcmp.eq.f32.partialorder %v638_v3, 8.507059e+37 }
 0x2ad   :  { %vm658_vm11 = vcmp.eq.f32.partialorder %v657_v0, 8.507059e+37 }
 0x2ae   :  { %v1449_v15 = vpop.eup %1448 }
 0x2af   :  { %v667_v16 = vadd.f32 1.0, %v1449_v15 }
 0x2b0   :  { %v1451_v18 = vpop.eup %1450 }
 0x2b1   :  { %v1453_v11 = vpop.eup %1452  ;;  %v630_v20 = vmul.f32 %v1451_v18, %v628_v5  ;;  %1454 = vrcp.f32 %v667_v16  ;;  %vm635_vm4 = vweird.f32 %v1451_v18  ;;  %vm673_vm13 = vweird.f32 %v667_v16 }
 0x2b2   :  { %v649_v9 = vmul.f32 %v1453_v11, %v647_v4  ;;  %1456 = vtanh.f32 %v623_v19  ;;  %vm654_vm5 = vweird.f32 %v1453_v11  ;;  %vm636_vm8 = vmor %vm634_vm6, %vm635_vm4 }
 0x2b3   :  { %v631_v10 = vsub.f32 1.0, %v630_v20  ;;  %vm655_vm9 = vmor %vm653_vm7, %vm654_vm5  ;;  %v660_v20 = vor.u32 1.1754944e-38, %v659_v6  ;;  %v3168_v6 = vld [vmem:[#allocation7_spill] sm:$0xff] }
 0x2b4   :  { %v650_v17 = vsub.f32 1.0, %v649_v9 }
 0x2b5   :  { %v632_v8 = vmul.f32 %v1451_v18, %v631_v10 }
 0x2b6   :  { %v651_v1 = vmul.f32 %v1453_v11, %v650_v17 }
 0x2b7   :  { %v1455_v54 = vpop.eup %1454  ;;  %v633_v42 = vadd.f32 %v1451_v18, %v632_v8 }
 0x2b8   :  { %v652_v14 = vadd.f32 %v1453_v11, %v651_v1  ;;  %v669_v15 = vmul.f32 %v1455_v54, %v667_v16  ;;  %v1457_v19 = vpop.eup %1456  ;;  %vm674_vm12 = vweird.f32 %v1455_v54  ;;  %v679_v1 = vand.u32 2147483648, %v667_v16 }
 0x2b9   :  { %v637_v9 = vsel %vm636_vm8, %v1451_v18, %v633_v42  ;;  %v677_v42 = vand.u32 2147483647, %v667_v16  ;;  %vm675_vm14 = vmor %vm673_vm13, %vm674_vm12  ;;  %v3167_v16 = vld [vmem:[#allocation6_spill] sm:$0xff] }
 0x2ba   :  { %v642_v49 = vsel %vm639_vm10, %v641_v13, %v637_v9  ;;  %v656_v10 = vsel %vm655_vm9, %v1453_v11, %v652_v14  ;;  %v670_v59 = vsub.f32 1.0, %v669_v15  ;;  %v680_v18 = vor.u32 1.1754944e-38, %v679_v1  ;;  %v3169_v13 = vld [vmem:[#allocation8_spill] sm:$0xff]  ;;  %v3171_v15 = vld [vmem:[#allocation9_spill] sm:$0xff]  ;;  %v3173_v9 = vld [vmem:[#allocation11_spill] sm:$0xff] }
 0x2bb   :  { %v661_v17 = vsel %vm658_vm11, %v660_v20, %v656_v10  ;;  %v684_v61 = vmul.f32 %v1457_v19, %v642_v49  ;;  %vm678_vm15 = vcmp.eq.f32.partialorder %v677_v42, 8.507059e+37  ;;  %v3165_v49 = vld [vmem:[#allocation5_spill] sm:$0xff]  ;;  %v3170_v14 = vld [vmem:[#allocation24_spill] sm:$0xff]  ;;  %v3172_v20 = vld [vmem:[#allocation10_spill] sm:$0xff] }
 0x2bc   :  { %v683_v51 = vmul.f32 %v661_v17, %v2298_v12  ;;  %v671_v8 = vmul.f32 %v1455_v54, %v670_v59  ;;  %v3161_v12 = vld [vmem:[#allocation2_spill] sm:$0xff]  ;;  %v3164_v59 = vld [vmem:[#allocation4_spill] sm:$0xff]  ;;  %v3174_v19 = vld [vmem:[#allocation25_spill] sm:$0xff] }
 0x2bd   :  { %v3175_v10 = vld [vmem:[#allocation12_spill] sm:$0xff]  ;;  %v3176_v17 = vld [vmem:[#allocation13_spill] sm:$0xff]  ;;  %v3179_v1 = vld [vmem:[#allocation15_spill] sm:$0xff] }
 0x2be   :  { %v2698_v5 = vadd.f32 %v684_v61, %v683_v51  ;;  %v672_v4 = vadd.f32 %v1455_v54, %v671_v8  ;;  %v3162_v51 = vld [vmem:[#allocation16_spill] sm:$0xff]  ;;  %v3163_v61 = vld [vmem:[#allocation3_spill] sm:$0xff]  ;;  %v3177_v8 = vld [vmem:[#allocation14_spill] sm:$0xff] }
 0x2bf   :  { %v3180_v42 = vld [vmem:[#allocation17_spill] sm:$0xff] }
 0x2c0   :  { %1458 = vtanh.f32 %v2698_v5  ;;  %v676_v3 = vsel %vm675_vm14, %v1455_v54, %v672_v4  ;;  %v3166_v54 = vld [vmem:[#allocation20_spill] sm:$0xff]  ;;  %v3178_v4 = vld [vmem:[#allocation26_spill] sm:$0xff] }
 0x2c1   :  { %v681_v11 = vsel %vm678_vm15, %v680_v18, %v676_v3  ;;  %v3181_v3 = vld [vmem:[#allocation18_spill] sm:$0xff]  ;;  %v3182_v18 = vld [vmem:[#allocation27_spill] sm:$0xff] }
 0x2c6   :  { %v1459_v0 = vpop.eup %1458 }
 0x2c7   :  { %v687_v7 = vmul.f32 %v1459_v0, %v681_v11  ;;  %v3183_v0 = vld [vmem:[#allocation19_spill] sm:$0xff]  ;;  %v3184_v11 = vld [vmem:[#allocation21_spill] sm:$0xff] }
 0x2c9   :  { %709 = vmatmul.f32.vlgmr.msra.gmra.mxu0 %v687_v7  ;;  %729 = vmatmul.f32.vlgmr.msra.gmra.mxu1 %v687_v7 }
 0x2ca   :  { %749 = vmatmul.f32.vlgmr.msra.gmra.mxu2 %v687_v7  ;;  %769 = vmatmul.f32.vlgmr.msra.gmra.mxu3 %v687_v7  ;;  %v3185_v7 = vld [vmem:[#allocation22_spill] sm:$0xff] }
 0x2cb   :  { %997 = vmatpush.msra.mxu0 %v2304_v50  ;;  %1017 = vmatpush.msra.mxu1 %v2310_v21 }
 0x2cc   :  { %1037 = vmatpush.msra.mxu2 %v2316_v22  ;;  %1057 = vmatpush.msra.mxu3 %v2322_v23 }
 0x2cd   :  { %998 = vmatpush.msra.mxu0 %v2328_v24  ;;  %1018 = vmatpush.msra.mxu1 %v2334_v25 }
 0x2ce   :  { %1038 = vmatpush.msra.mxu2 %v2340_v26  ;;  %1058 = vmatpush.msra.mxu3 %v2346_v27 }
 0x2cf   :  { %999 = vmatpush.msra.mxu0 %v2352_v28  ;;  %1019 = vmatpush.msra.mxu1 %v2358_v29 }
 0x2d0   :  { %1039 = vmatpush.msra.mxu2 %v2364_v30  ;;  %1059 = vmatpush.msra.mxu3 %v2370_v31 }
 0x2d1   :  { %1000 = vmatpush.msra.mxu0 %v2376_v32  ;;  %1020 = vmatpush.msra.mxu1 %v2382_v33 }
 0x2d2   :  { %1040 = vmatpush.msra.mxu2 %v2388_v35  ;;  %1060 = vmatpush.msra.mxu3 %v2394_v39 }
 0x2d3   :  { %1001 = vmatpush.msra.mxu0 %v2400_v43  ;;  %1021 = vmatpush.msra.mxu1 %v2406_v47 }
 0x2d4   :  { %1041 = vmatpush.msra.mxu2 %v2412_v60  ;;  %1061 = vmatpush.msra.mxu3 %v2418_v63 }
 0x2d5   :  { %1002 = vmatpush.msra.mxu0 %v2424_v34  ;;  %1022 = vmatpush.msra.mxu1 %v2430_v36 }
 0x2d6   :  { %1042 = vmatpush.msra.mxu2 %v2436_v37  ;;  %1062 = vmatpush.msra.mxu3 %v2442_v40 }
 0x2d7   :  { %1003 = vmatpush.msra.mxu0 %v2448_v56  ;;  %1023 = vmatpush.msra.mxu1 %v2454_v44 }
 0x2d8   :  { %1043 = vmatpush.msra.mxu2 %v2460_v53  ;;  %1063 = vmatpush.msra.mxu3 %v2466_v46 }
 0x2d9   :  { %1004 = vmatpush.msra.mxu0 %v2472_v62  ;;  %1024 = vmatpush.msra.mxu1 %v2478_v45 }
 0x2da   :  { %1044 = vmatpush.msra.mxu2 %v2484_v57  ;;  %1064 = vmatpush.msra.mxu3 %v2490_v2 }
 0x2db   :  { %1005 = vmatpush.msra.mxu0 %v2496_v38  ;;  %1025 = vmatpush.msra.mxu1 %v2502_v55 }
 0x2dc   :  { %1045 = vmatpush.msra.mxu2 %v2508_v41  ;;  %1065 = vmatpush.msra.mxu3 %v2514_v58 }
 0x2dd   :  { %1006 = vmatpush.msra.mxu0 %v2520_v52  ;;  %1026 = vmatpush.msra.mxu1 %v2526_v48 }
 0x2de   :  { %1046 = vmatpush.msra.mxu2 %v3161_v12  ;;  %1066 = vmatpush.msra.mxu3 %v3162_v51 }
 0x2df   :  { %1007 = vmatpush.msra.mxu0 %v3163_v61  ;;  %1027 = vmatpush.msra.mxu1 %v3164_v59 }
 0x2e0   :  { %1047 = vmatpush.msra.mxu2 %v3165_v49  ;;  %1067 = vmatpush.msra.mxu3 %v3166_v54 }
 0x2e1   :  { %1008 = vmatpush.msra.mxu0 %v3167_v16  ;;  %1028 = vmatpush.msra.mxu1 %v3168_v6 }
 0x2e2   :  { %1048 = vmatpush.msra.mxu2 %v3169_v13  ;;  %1068 = vmatpush.msra.mxu3 %v3170_v14 }
 0x2e3   :  { %1009 = vmatpush.msra.mxu0 %v3171_v15  ;;  %1029 = vmatpush.msra.mxu1 %v3172_v20 }
 0x2e4   :  { %1049 = vmatpush.msra.mxu2 %v3173_v9  ;;  %1069 = vmatpush.msra.mxu3 %v3174_v19 }
 0x2e5   :  { %1010 = vmatpush.msra.mxu0 %v3175_v10  ;;  %1030 = vmatpush.msra.mxu1 %v3176_v17  ;;  %v3186_v10 = vld [vmem:[#allocation28_spill] sm:$0xff] }
 0x2e6   :  { %1050 = vmatpush.msra.mxu2 %v3177_v8  ;;  %1070 = vmatpush.msra.mxu3 %v3178_v4  ;;  %v1366_v4 = vld [vmem:[%s2945_s0 + $0x80] sm:$0xff] }
 0x2e7   :  { %1011 = vmatpush.msra.mxu0 %v3179_v1  ;;  %1031 = vmatpush.msra.mxu1 %v3180_v42  ;;  %v1367_v42 = vld [vmem:[%s2945_s0 + $0x88] sm:$0xff] }
 0x2e8   :  { %1051 = vmatpush.msra.mxu2 %v3181_v3  ;;  %1071 = vmatpush.msra.mxu3 %v3182_v18 }
 0x2e9   :  { %1012 = vmatpush.msra.mxu0 %v3183_v0  ;;  %1032 = vmatpush.msra.mxu1 %v3184_v11 }
 0x2ea   :  { %1052 = vmatpush.msra.mxu2 %v3185_v7  ;;  %1072 = vmatpush.msra.mxu3 %v3186_v10  ;;  %v1369_v7 = vld [vmem:[%s2945_s0 + $0x98] sm:$0xff] }
 0x346   :  { %v710_v1 = vpop.f32.mrf.mxu0  ;;  %v730_v3 = vpop.f32.mrf.mxu1 }
 0x347   :  { %v773_v8 = vadd.f32 %v1366_v4, %v710_v1  ;;  %v774_v18 = vadd.f32 %v1367_v42, %v730_v3 }
 0x349   :  { %v1370_v17 = vmul.f32 -1.442695, %v773_v8  ;;  %v1371_v0 = vmul.f32 -1.442695, %v774_v18  ;;  %v1368_v8 = vld [vmem:[%s2945_s0 + $0x90] sm:$0xff] }
 0x34b   :  { %1460 = vpow2.f32 %v1370_v17 }
 0x34c   :  { %1462 = vpow2.f32 %v1371_v0 }
 0x34d   :  { %v770_v10 = vpop.f32.mrf.mxu3  ;;  %v750_v17 = vpop.f32.mrf.mxu2 }
 0x34e   :  { %v776_v11 = vadd.f32 %v1369_v7, %v770_v10  ;;  %v775_v3 = vadd.f32 %v1368_v8, %v750_v17 }
 0x350   :  { %v1372_v19 = vmul.f32 -1.442695, %v776_v11 }
 0x351   :  { %v1461_v9 = vpop.eup %1460 }
 0x352   :  { %v1463_v20 = vpop.eup %1462  ;;  %v780_v15 = vadd.f32 1.0, %v1461_v9  ;;  %1464 = vpow2.f32 %v1372_v19 }
 0x353   :  { %v799_v14 = vadd.f32 1.0, %v1463_v20 }
 0x354   :  { %1466 = vrcp.f32 %v780_v15  ;;  %v792_v9 = vand.u32 2147483648, %v780_v15  ;;  %v790_v13 = vand.u32 2147483647, %v780_v15  ;;  %vm786_vm2 = vweird.f32 %v780_v15 }
 0x355   :  { %1468 = vrcp.f32 %v799_v14  ;;  %v811_v20 = vand.u32 2147483648, %v799_v14  ;;  %v809_v16 = vand.u32 2147483647, %v799_v14  ;;  %vm805_vm3 = vweird.f32 %v799_v14 }
 0x356   :  { %v793_v8 = vor.u32 1.1754944e-38, %v792_v9  ;;  %vm791_vm6 = vcmp.eq.f32.partialorder %v790_v13, 8.507059e+37 }
 0x357   :  { %vm810_vm7 = vcmp.eq.f32.partialorder %v809_v16, 8.507059e+37 }
 0x358   :  { %v1465_v4 = vpop.eup %1464 }
 0x359   :  { %v819_v1 = vadd.f32 1.0, %v1465_v4 }
 0x35a   :  { %v1467_v42 = vpop.eup %1466 }
 0x35b   :  { %v1469_v18 = vpop.eup %1468  ;;  %v782_v0 = vmul.f32 %v1467_v42, %v780_v15  ;;  %1470 = vrcp.f32 %v819_v1  ;;  %vm787_vm0 = vweird.f32 %v1467_v42  ;;  %vm825_vm9 = vweird.f32 %v819_v1 }
 0x35c   :  { %v801_v10 = vmul.f32 %v1469_v18, %v799_v14  ;;  %1472 = vtanh.f32 %v775_v3  ;;  %vm806_vm1 = vweird.f32 %v1469_v18  ;;  %vm788_vm4 = vmor %vm786_vm2, %vm787_vm0 }
 0x35d   :  { %v783_v11 = vsub.f32 1.0, %v782_v0  ;;  %vm807_vm5 = vmor %vm805_vm3, %vm806_vm1  ;;  %v812_v0 = vor.u32 1.1754944e-38, %v811_v20 }
 0x35e   :  { %v802_v7 = vsub.f32 1.0, %v801_v10 }
 0x35f   :  { %v784_v19 = vmul.f32 %v1467_v42, %v783_v11 }
 0x360   :  { %v803_v6 = vmul.f32 %v1469_v18, %v802_v7 }
 0x361   :  { %v1471_v54 = vpop.eup %1470  ;;  %v785_v49 = vadd.f32 %v1467_v42, %v784_v19 }
 0x362   :  { %v804_v17 = vadd.f32 %v1469_v18, %v803_v6  ;;  %v821_v4 = vmul.f32 %v1471_v54, %v819_v1  ;;  %v1473_v3 = vpop.eup %1472  ;;  %vm826_vm8 = vweird.f32 %v1471_v54  ;;  %v831_v6 = vand.u32 2147483648, %v819_v1 }
 0x363   :  { %v789_v10 = vsel %vm788_vm4, %v1467_v42, %v785_v49  ;;  %v829_v49 = vand.u32 2147483647, %v819_v1  ;;  %vm827_vm10 = vmor %vm825_vm9, %vm826_vm8 }
 0x364   :  { %v794_v59 = vsel %vm791_vm6, %v793_v8, %v789_v10  ;;  %v808_v11 = vsel %vm807_vm5, %v1469_v18, %v804_v17  ;;  %v822_v61 = vsub.f32 1.0, %v821_v4  ;;  %v832_v42 = vor.u32 1.1754944e-38, %v831_v6 }
 0x365   :  { %v813_v7 = vsel %vm810_vm7, %v812_v0, %v808_v11  ;;  %v836_v51 = vmul.f32 %v1473_v3, %v794_v59  ;;  %vm830_vm11 = vcmp.eq.f32.partialorder %v829_v49, 8.507059e+37  ;;  %v1375_v59 = vld [vmem:[%s2945_s0 + $0xb0] sm:$0xff] }
 0x366   :  { %v835_v12 = vmul.f32 %v813_v7, %v2698_v5  ;;  %v823_v19 = vmul.f32 %v1471_v54, %v822_v61 }
 0x368   :  { %v2778_v15 = vadd.f32 %v836_v51, %v835_v12  ;;  %v824_v14 = vadd.f32 %v1471_v54, %v823_v19 }
 0x36a   :  { %1474 = vtanh.f32 %v2778_v15  ;;  %v828_v13 = vsel %vm827_vm10, %v1471_v54, %v824_v14 }
 0x36b   :  { %v833_v18 = vsel %vm830_vm11, %v832_v42, %v828_v13 }
 0x370   :  { %v1475_v16 = vpop.eup %1474 }
 0x371   :  { %v839_v9 = vmul.f32 %v1475_v16, %v833_v18 }
 0x373   :  { %861 = vmatmul.f32.vlgmr.msrb.gmra.mxu0 %v839_v9  ;;  %881 = vmatmul.f32.vlgmr.msrb.gmra.mxu1 %v839_v9 }
 0x374   :  { %901 = vmatmul.f32.vlgmr.msrb.gmra.mxu2 %v839_v9  ;;  %921 = vmatmul.f32.vlgmr.msrb.gmra.mxu3 %v839_v9 }
 0x375   :  { %1149 = vmatpush.msrb.mxu0 %v2304_v50  ;;  %1169 = vmatpush.msrb.mxu1 %v2310_v21  ;;  %v3187_v50 = vld [vmem:[#allocation2_spill] sm:$0xff]  ;;  %v3188_v21 = vld [vmem:[#allocation16_spill] sm:$0xff] }
 0x376   :  { %1189 = vmatpush.msrb.mxu2 %v2316_v22  ;;  %1209 = vmatpush.msrb.mxu3 %v2322_v23  ;;  %v3189_v22 = vld [vmem:[#allocation3_spill] sm:$0xff]  ;;  %v3190_v23 = vld [vmem:[#allocation4_spill] sm:$0xff] }
 0x377   :  { %1150 = vmatpush.msrb.mxu0 %v2328_v24  ;;  %1170 = vmatpush.msrb.mxu1 %v2334_v25  ;;  %v3191_v24 = vld [vmem:[#allocation5_spill] sm:$0xff]  ;;  %v3192_v25 = vld [vmem:[#allocation20_spill] sm:$0xff] }
 0x378   :  { %1190 = vmatpush.msrb.mxu2 %v2340_v26  ;;  %1210 = vmatpush.msrb.mxu3 %v2346_v27  ;;  %v3193_v26 = vld [vmem:[#allocation6_spill] sm:$0xff]  ;;  %v3194_v27 = vld [vmem:[#allocation7_spill] sm:$0xff] }
 0x379   :  { %1151 = vmatpush.msrb.mxu0 %v2352_v28  ;;  %1171 = vmatpush.msrb.mxu1 %v2358_v29  ;;  %v3195_v28 = vld [vmem:[#allocation8_spill] sm:$0xff] }
 0x37a   :  { %1191 = vmatpush.msrb.mxu2 %v2364_v30  ;;  %1211 = vmatpush.msrb.mxu3 %v2370_v31  ;;  %v3196_v29 = vld [vmem:[#allocation24_spill] sm:$0xff]  ;;  %v3197_v30 = vld [vmem:[#allocation9_spill] sm:$0xff]  ;;  %v3198_v31 = vld [vmem:[#allocation10_spill] sm:$0xff] }
 0x37b   :  { %1152 = vmatpush.msrb.mxu0 %v2376_v32  ;;  %1172 = vmatpush.msrb.mxu1 %v2382_v33  ;;  %v3199_v32 = vld [vmem:[#allocation11_spill] sm:$0xff]  ;;  %v3200_v33 = vld [vmem:[#allocation25_spill] sm:$0xff] }
 0x37c   :  { %1192 = vmatpush.msrb.mxu2 %v2388_v35  ;;  %1212 = vmatpush.msrb.mxu3 %v2394_v39  ;;  %v3201_v35 = vld [vmem:[#allocation12_spill] sm:$0xff]  ;;  %v3202_v39 = vld [vmem:[#allocation13_spill] sm:$0xff] }
 0x37d   :  { %1153 = vmatpush.msrb.mxu0 %v2400_v43  ;;  %1173 = vmatpush.msrb.mxu1 %v2406_v47  ;;  %v3203_v43 = vld [vmem:[#allocation14_spill] sm:$0xff] }
 0x37e   :  { %1193 = vmatpush.msrb.mxu2 %v2412_v60  ;;  %1213 = vmatpush.msrb.mxu3 %v2418_v63  ;;  %v3204_v47 = vld [vmem:[#allocation26_spill] sm:$0xff]  ;;  %v3205_v60 = vld [vmem:[#allocation15_spill] sm:$0xff]  ;;  %v3206_v63 = vld [vmem:[#allocation17_spill] sm:$0xff] }
 0x37f   :  { %1154 = vmatpush.msrb.mxu0 %v2424_v34  ;;  %1174 = vmatpush.msrb.mxu1 %v2430_v36  ;;  %v3207_v34 = vld [vmem:[#allocation18_spill] sm:$0xff]  ;;  %v3208_v36 = vld [vmem:[#allocation27_spill] sm:$0xff] }
 0x380   :  { %1194 = vmatpush.msrb.mxu2 %v2436_v37  ;;  %1214 = vmatpush.msrb.mxu3 %v2442_v40  ;;  %v3209_v37 = vld [vmem:[#allocation19_spill] sm:$0xff]  ;;  %v3210_v40 = vld [vmem:[#allocation21_spill] sm:$0xff] }
 0x381   :  { %1155 = vmatpush.msrb.mxu0 %v2448_v56  ;;  %1175 = vmatpush.msrb.mxu1 %v2454_v44  ;;  %v3211_v56 = vld [vmem:[#allocation22_spill] sm:$0xff]  ;;  %v3212_v44 = vld [vmem:[#allocation28_spill] sm:$0xff] }
 0x382   :  { %1195 = vmatpush.msrb.mxu2 %v2460_v53  ;;  %1215 = vmatpush.msrb.mxu3 %v2466_v46  ;;  %v1373_v53 = vld [vmem:[%s2945_s0 + $0xa0] sm:$0xff]  ;;  %v1374_v46 = vld [vmem:[%s2945_s0 + $0xa8] sm:$0xff] }
 0x383   :  { %1156 = vmatpush.msrb.mxu0 %v2472_v62  ;;  %1176 = vmatpush.msrb.mxu1 %v2478_v45 }
 0x384   :  { %1196 = vmatpush.msrb.mxu2 %v2484_v57  ;;  %1216 = vmatpush.msrb.mxu3 %v2490_v2 }
 0x385   :  { %1157 = vmatpush.msrb.mxu0 %v2496_v38  ;;  %1177 = vmatpush.msrb.mxu1 %v2502_v55 }
 0x386   :  { %1197 = vmatpush.msrb.mxu2 %v2508_v41  ;;  %1217 = vmatpush.msrb.mxu3 %v2514_v58  ;;  %v1376_v41 = vld [vmem:[%s2945_s0 + $0xb8] sm:$0xff] }
 0x387   :  { %1158 = vmatpush.msrb.mxu0 %v2520_v52  ;;  %1178 = vmatpush.msrb.mxu1 %v2526_v48 }
 0x388   :  { %1198 = vmatpush.msrb.mxu2 %v3187_v50  ;;  %1218 = vmatpush.msrb.mxu3 %v3188_v21 }
 0x389   :  { %1159 = vmatpush.msrb.mxu0 %v3189_v22  ;;  %1179 = vmatpush.msrb.mxu1 %v3190_v23 }
 0x38a   :  { %1199 = vmatpush.msrb.mxu2 %v3191_v24  ;;  %1219 = vmatpush.msrb.mxu3 %v3192_v25 }
 0x38b   :  { %1160 = vmatpush.msrb.mxu0 %v3193_v26  ;;  %1180 = vmatpush.msrb.mxu1 %v3194_v27 }
 0x38c   :  { %1200 = vmatpush.msrb.mxu2 %v3195_v28  ;;  %1220 = vmatpush.msrb.mxu3 %v3196_v29 }
 0x38d   :  { %1161 = vmatpush.msrb.mxu0 %v3197_v30  ;;  %1181 = vmatpush.msrb.mxu1 %v3198_v31 }
 0x38e   :  { %1201 = vmatpush.msrb.mxu2 %v3199_v32  ;;  %1221 = vmatpush.msrb.mxu3 %v3200_v33 }
 0x38f   :  { %1162 = vmatpush.msrb.mxu0 %v3201_v35  ;;  %1182 = vmatpush.msrb.mxu1 %v3202_v39 }
 0x390   :  { %1202 = vmatpush.msrb.mxu2 %v3203_v43  ;;  %1222 = vmatpush.msrb.mxu3 %v3204_v47 }
 0x391   :  { %1163 = vmatpush.msrb.mxu0 %v3205_v60  ;;  %1183 = vmatpush.msrb.mxu1 %v3206_v63 }
 0x392   :  { %1203 = vmatpush.msrb.mxu2 %v3207_v34  ;;  %1223 = vmatpush.msrb.mxu3 %v3208_v36  ;;  %v1381_v34 = vld [vmem:[%s2945_s0 + $0xc8] sm:$0xff] }
 0x393   :  { %1164 = vmatpush.msrb.mxu0 %v3209_v37  ;;  %1184 = vmatpush.msrb.mxu1 %v3210_v40 }
 0x394   :  { %1204 = vmatpush.msrb.mxu2 %v3211_v56  ;;  %1224 = vmatpush.msrb.mxu3 %v3212_v44 }
 0x3f0   :  { %v862_v62 = vpop.f32.mrf.mxu0  ;;  %v882_v45 = vpop.f32.mrf.mxu1 }
 0x3f1   :  { %v925_v57 = vadd.f32 %v1373_v53, %v862_v62  ;;  %v926_v2 = vadd.f32 %v1374_v46, %v882_v45  ;;  %v1383_v46 = vld [vmem:[%s2945_s0 + $0xd8] sm:$0xff] }
 0x3f3   :  { %v1377_v38 = vmul.f32 -1.442695, %v925_v57  ;;  %v1378_v55 = vmul.f32 -1.442695, %v926_v2 }
 0x3f5   :  { %1476 = vpow2.f32 %v1377_v38 }
 0x3f6   :  { %1478 = vpow2.f32 %v1378_v55 }
 0x3f7   :  { %v922_v58 = vpop.f32.mrf.mxu3  ;;  %v902_v54 = vpop.f32.mrf.mxu2 }
 0x3f8   :  { %v928_v52 = vadd.f32 %v1376_v41, %v922_v58  ;;  %v927_v17 = vadd.f32 %v1375_v59, %v902_v54  ;;  %v1382_v58 = vld [vmem:[%s2945_s0 + $0xd0] sm:$0xff] }
 0x3fa   :  { %v1379_v48 = vmul.f32 -1.442695, %v928_v52 }
 0x3fb   :  { %v1477_v5 = vpop.eup %1476 }
 0x3fc   :  { %v1479_v12 = vpop.eup %1478  ;;  %v932_v51 = vadd.f32 1.0, %v1477_v5  ;;  %1480 = vpow2.f32 %v1379_v48 }
 0x3fd   :  { %v951_v61 = vadd.f32 1.0, %v1479_v12 }
 0x3fe   :  { %1482 = vrcp.f32 %v932_v51  ;;  %v944_v7 = vand.u32 2147483648, %v932_v51  ;;  %v942_v6 = vand.u32 2147483647, %v932_v51  ;;  %vm938_vm14 = vweird.f32 %v932_v51 }
 0x3ff   :  { %1484 = vrcp.f32 %v951_v61  ;;  %v963_v19 = vand.u32 2147483648, %v951_v61  ;;  %v961_v13 = vand.u32 2147483647, %v951_v61  ;;  %vm957_vm15 = vweird.f32 %v951_v61 }
 0x400   :  { %v945_v18 = vor.u32 1.1754944e-38, %v944_v7  ;;  %vm943_vm2 = vcmp.eq.f32.partialorder %v942_v6, 8.507059e+37 }
 0x401   :  { %v964_v21 = vor.u32 1.1754944e-38, %v963_v19  ;;  %vm962_vm3 = vcmp.eq.f32.partialorder %v961_v13, 8.507059e+37 }
 0x402   :  { %v1481_v1 = vpop.eup %1480 }
 0x403   :  { %v971_v20 = vadd.f32 1.0, %v1481_v1 }
 0x404   :  { %v1483_v8 = vpop.eup %1482 }
 0x405   :  { %v1485_v4 = vpop.eup %1484  ;;  %v934_v0 = vmul.f32 %v1483_v8, %v932_v51  ;;  %1486 = vrcp.f32 %v971_v20  ;;  %vm939_vm12 = vweird.f32 %v1483_v8  ;;  %v983_v33 = vand.u32 2147483648, %v971_v20 }
 0x406   :  { %v953_v10 = vmul.f32 %v1485_v4, %v951_v61  ;;  %1488 = vtanh.f32 %v927_v17  ;;  %vm958_vm13 = vweird.f32 %v1485_v4  ;;  %vm940_vm0 = vmor %vm938_vm14, %vm939_vm12  ;;  %vm977_vm5 = vweird.f32 %v971_v20 }
 0x407   :  { %v935_v3 = vsub.f32 1.0, %v934_v0  ;;  %vm959_vm1 = vmor %vm957_vm15, %vm958_vm13  ;;  %v981_v35 = vand.u32 2147483647, %v971_v20  ;;  %v984_v43 = vor.u32 1.1754944e-38, %v983_v33 }
 0x408   :  { %v954_v11 = vsub.f32 1.0, %v953_v10 }
 0x409   :  { %v936_v14 = vmul.f32 %v1483_v8, %v935_v3  ;;  %vm982_vm7 = vcmp.eq.f32.partialorder %v981_v35, 8.507059e+37  ;;  %v1310_v35 = vld [vmem:[%s2947_s2 + $0x70] sm:$0xff] }
 0x40a   :  { %v955_v49 = vmul.f32 %v1485_v4, %v954_v11 }
 0x40b   :  { %v1487_v42 = vpop.eup %1486  ;;  %v937_v16 = vadd.f32 %v1483_v8, %v936_v14 }
 0x40c   :  { %v956_v9 = vadd.f32 %v1485_v4, %v955_v49  ;;  %v973_v50 = vmul.f32 %v1487_v42, %v971_v20  ;;  %v1489_v23 = vpop.eup %1488  ;;  %vm978_vm4 = vweird.f32 %v1487_v42 }
 0x40d   :  { %v941_v22 = vsel %vm940_vm0, %v1483_v8, %v937_v16  ;;  %vm979_vm6 = vmor %vm977_vm5, %vm978_vm4 }
 0x40e   :  { %v946_v24 = vsel %vm943_vm2, %v945_v18, %v941_v22  ;;  %v960_v25 = vsel %vm959_vm1, %v1485_v4, %v956_v9  ;;  %v974_v26 = vsub.f32 1.0, %v973_v50 }
 0x40f   :  { %v965_v27 = vsel %vm962_vm3, %v964_v21, %v960_v25  ;;  %v988_v28 = vmul.f32 %v1489_v23, %v946_v24 }
 0x410   :  { %v987_v29 = vmul.f32 %v965_v27, %v2778_v15  ;;  %v975_v30 = vmul.f32 %v1487_v42, %v974_v26  ;;  %v1380_v15 = vld [vmem:[%s2945_s0 + $0xc0] sm:$0xff] }
 0x412   :  { %v2858_v31 = vadd.f32 %v988_v28, %v987_v29  ;;  %v976_v32 = vadd.f32 %v1487_v42, %v975_v30 }
 0x414   :  { %1490 = vtanh.f32 %v2858_v31  ;;  %v980_v39 = vsel %vm979_vm6, %v1487_v42, %v976_v32 }
 0x415   :  { %v985_v60 = vsel %vm982_vm7, %v984_v43, %v980_v39  ;;  %v1309_v39 = vld [vmem:[%s2947_s2 + $0x68] sm:$0xff]  ;;  %v1308_v43 = vld [vmem:[%s2947_s2 + $0x60] sm:$0xff] }
 0x41a   :  { %v1491_v47 = vpop.eup %1490 }
 0x41b   :  { %v991_v63 = vmul.f32 %v1491_v47, %v985_v60  ;;  %v1307_v47 = vld [vmem:[%s2947_s2 + $0x58] sm:$0xff]  ;;  %v1306_v60 = vld [vmem:[%s2947_s2 + $0x50] sm:$0xff] }
 0x41d   :  { %1013 = vmatmul.f32.vlgmr.msra.gmra.mxu0 %v991_v63  ;;  %1033 = vmatmul.f32.vlgmr.msra.gmra.mxu1 %v991_v63 }
 0x41e   :  { %1053 = vmatmul.f32.vlgmr.msra.gmra.mxu2 %v991_v63  ;;  %1073 = vmatmul.f32.vlgmr.msra.gmra.mxu3 %v991_v63  ;;  %v1305_v63 = vld [vmem:[%s2947_s2 + $0x48] sm:$0xff] }
 0x49a   :  { %v1014_v36 = vpop.f32.mrf.mxu0  ;;  %v1034_v37 = vpop.f32.mrf.mxu1 }
 0x49b   :  { %v1077_v40 = vadd.f32 %v1380_v15, %v1014_v36  ;;  %v1078_v56 = vadd.f32 %v1381_v34, %v1034_v37  ;;  %v1304_v15 = vld [vmem:[%s2947_s2 + $0x40] sm:$0xff]  ;;  %v1303_v34 = vld [vmem:[%s2947_s2 + $0x38] sm:$0xff]  ;;  %v1388_v37 = vld [vmem:[%s2945_s0 + $0xe8] sm:$0xff] }
 0x49c   :  { %v1387_v36 = vld [vmem:[%s2945_s0 + $0xe0] sm:$0xff] }
 0x49d   :  { %v1384_v44 = vmul.f32 -1.442695, %v1077_v40  ;;  %v1385_v53 = vmul.f32 -1.442695, %v1078_v56  ;;  %v1302_v40 = vld [vmem:[%s2947_s2 + $0x30] sm:$0xff] }
 0x49f   :  { %1492 = vpow2.f32 %v1384_v44 }
 0x4a0   :  { %1494 = vpow2.f32 %v1385_v53 }
 0x4a1   :  { %v1074_v62 = vpop.f32.mrf.mxu3  ;;  %v1054_v52 = vpop.f32.mrf.mxu2 }
 0x4a2   :  { %v1080_v45 = vadd.f32 %v1383_v46, %v1074_v62  ;;  %v1079_v51 = vadd.f32 %v1382_v58, %v1054_v52  ;;  %v1301_v62 = vld [vmem:[%s2947_s2 + $0x28] sm:$0xff] }
 0x4a3   :  { %v1297_v52 = vld [vmem:[%s2947_s2 + $0x8] sm:$0xff] }
 0x4a4   :  { %v1386_v57 = vmul.f32 -1.442695, %v1080_v45 }
 0x4a5   :  { %v1493_v2 = vpop.eup %1492 }
 0x4a6   :  { %v1495_v38 = vpop.eup %1494  ;;  %v1084_v55 = vadd.f32 1.0, %v1493_v2  ;;  %1496 = vpow2.f32 %v1386_v57  ;;  %v1300_v2 = vld [vmem:[%s2947_s2 + $0x20] sm:$0xff] }
 0x4a7   :  { %v1103_v41 = vadd.f32 1.0, %v1495_v38  ;;  %v1299_v38 = vld [vmem:[%s2947_s2 + $0x18] sm:$0xff] }
 0x4a8   :  { %1498 = vrcp.f32 %v1084_v55  ;;  %v1096_v8 = vand.u32 2147483648, %v1084_v55  ;;  %v1094_v0 = vand.u32 2147483647, %v1084_v55  ;;  %vm1090_vm10 = vweird.f32 %v1084_v55 }
 0x4a9   :  { %1500 = vrcp.f32 %v1103_v41  ;;  %v1115_v17 = vand.u32 2147483648, %v1103_v41  ;;  %v1113_v3 = vand.u32 2147483647, %v1103_v41  ;;  %vm1109_vm11 = vweird.f32 %v1103_v41 }
 0x4aa   :  { %v1097_v19 = vor.u32 1.1754944e-38, %v1096_v8  ;;  %vm1095_vm14 = vcmp.eq.f32.partialorder %v1094_v0, 8.507059e+37 }
 0x4ab   :  { %v1116_v49 = vor.u32 1.1754944e-38, %v1115_v17  ;;  %vm1114_vm15 = vcmp.eq.f32.partialorder %v1113_v3, 8.507059e+37 }
 0x4ac   :  { %v1497_v48 = vpop.eup %1496 }
 0x4ad   :  { %v1123_v5 = vadd.f32 1.0, %v1497_v48 }
 0x4ae   :  { %v1499_v12 = vpop.eup %1498 }
 0x4af   :  { %v1501_v61 = vpop.eup %1500  ;;  %v1086_v59 = vmul.f32 %v1499_v12, %v1084_v55  ;;  %1502 = vrcp.f32 %v1123_v5  ;;  %vm1091_vm8 = vweird.f32 %v1499_v12  ;;  %v1135_v26 = vand.u32 2147483648, %v1123_v5  ;;  %v1390_v55 = vld [vmem:[%s2945_s0 + $0xf8] sm:$0xff] }
 0x4b0   :  { %v1105_v54 = vmul.f32 %v1501_v61, %v1103_v41  ;;  %1504 = vtanh.f32 %v1079_v51  ;;  %vm1110_vm9 = vweird.f32 %v1501_v61  ;;  %vm1092_vm12 = vmor %vm1090_vm10, %vm1091_vm8  ;;  %vm1129_vm1 = vweird.f32 %v1123_v5  ;;  %v1298_v41 = vld [vmem:[%s2947_s2 + $0x10] sm:$0xff] }
 0x4b1   :  { %v1087_v1 = vsub.f32 1.0, %v1086_v59  ;;  %vm1111_vm13 = vmor %vm1109_vm11, %vm1110_vm9  ;;  %v1133_v27 = vand.u32 2147483647, %v1123_v5  ;;  %v1136_v29 = vor.u32 1.1754944e-38, %v1135_v26 }
 0x4b2   :  { %v1106_v20 = vsub.f32 1.0, %v1105_v54 }
 0x4b3   :  { %v1088_v4 = vmul.f32 %v1499_v12, %v1087_v1  ;;  %vm1134_vm3 = vcmp.eq.f32.partialorder %v1133_v27, 8.507059e+37  ;;  %v1389_v1 = vld [vmem:[%s2945_s0 + $0xf0] sm:$0xff] }
 0x4b4   :  { %v1107_v10 = vmul.f32 %v1501_v61, %v1106_v20 }
 0x4b5   :  { %v1503_v11 = vpop.eup %1502  ;;  %v1089_v7 = vadd.f32 %v1499_v12, %v1088_v4 }
 0x4b6   :  { %v1108_v14 = vadd.f32 %v1501_v61, %v1107_v10  ;;  %v1125_v6 = vmul.f32 %v1503_v11, %v1123_v5  ;;  %v1505_v42 = vpop.eup %1504  ;;  %vm1130_vm0 = vweird.f32 %v1503_v11  ;;  %v1296_v5 = vld [vmem:[%s2947_s2] sm:$0xff] }
 0x4b7   :  { %v1093_v13 = vsel %vm1092_vm12, %v1499_v12, %v1089_v7  ;;  %vm1131_vm2 = vmor %vm1129_vm1, %vm1130_vm0  ;;  %vm1336_vm0 = vcmask 15360  }
 0x4b8   :  { %v1098_v16 = vsel %vm1095_vm14, %v1097_v19, %v1093_v13  ;;  %v1112_v18 = vsel %vm1111_vm13, %v1501_v61, %v1108_v14  ;;  %v1126_v9 = vsub.f32 1.0, %v1125_v6 }
 0x4b9   :  { %v1117_v50 = vsel %vm1114_vm15, %v1116_v49, %v1112_v18  ;;  %v1140_v21 = vmul.f32 %v1505_v42, %v1098_v16 }
 0x4ba   :  { %v1139_v22 = vmul.f32 %v1117_v50, %v2858_v31  ;;  %v1127_v23 = vmul.f32 %v1503_v11, %v1126_v9  ;;  %v1311_v31 = vld [vmem:[%s2947_s2 + $0x78] sm:$0xff] }
 0x4bb   :  { %1316 = vmatpush.msra.mxu0 %v1311_v31 }
 0x4bc   :  { %v2874_v24 = vadd.f32 %v1140_v21, %v1139_v22  ;;  %v1128_v25 = vadd.f32 %v1503_v11, %v1127_v23 }
 0x4bd   :  { %1317 = vmatpush.msra.mxu0 %v1310_v35 }
 0x4be   :  { %1506 = vtanh.f32 %v2874_v24  ;;  %v1132_v28 = vsel %vm1131_vm2, %v1503_v11, %v1128_v25 }
 0x4bf   :  { %v1137_v32 = vsel %vm1134_vm3, %v1136_v29, %v1132_v28  ;;  %1318 = vmatpush.msra.mxu0 %v1309_v39 }
 0x4c1   :  { %1319 = vmatpush.msra.mxu0 %v1308_v43 }
 0x4c3   :  { %1320 = vmatpush.msra.mxu0 %v1307_v47 }
 0x4c4   :  { %v1507_v30 = vpop.eup %1506 }
 0x4c5   :  { %v1143_v33 = vmul.f32 %v1507_v30, %v1137_v32  ;;  %1321 = vmatpush.msra.mxu0 %v1306_v60 }
 0x4c7   :  { %1165 = vmatmul.f32.vlgmr.msrb.gmra.mxu0 %v1143_v33  ;;  %1185 = vmatmul.f32.vlgmr.msrb.gmra.mxu1 %v1143_v33 }
 0x4c8   :  { %1205 = vmatmul.f32.vlgmr.msrb.gmra.mxu2 %v1143_v33  ;;  %1225 = vmatmul.f32.vlgmr.msrb.gmra.mxu3 %v1143_v33 }
 0x4c9   :  { %1322 = vmatpush.msra.mxu0 %v1305_v63 }
 0x4cb   :  { %1323 = vmatpush.msra.mxu0 %v1304_v15 }
 0x4cd   :  { %1324 = vmatpush.msra.mxu0 %v1303_v34 }
 0x4cf   :  { %1325 = vmatpush.msra.mxu0 %v1302_v40 }
 0x4d1   :  { %1326 = vmatpush.msra.mxu0 %v1301_v62 }
 0x4d3   :  { %1327 = vmatpush.msra.mxu0 %v1300_v2 }
 0x4d5   :  { %1328 = vmatpush.msra.mxu0 %v1299_v38 }
 0x4d7   :  { %1329 = vmatpush.msra.mxu0 %v1298_v41 }
 0x4d9   :  { %1330 = vmatpush.msra.mxu0 %v1297_v52 }
 0x4db   :  { %1331 = vmatpush.msra.mxu0 %v1296_v5 }
 0x544   :  { %v1166_v56 = vpop.f32.mrf.mxu0  ;;  %v1186_v44 = vpop.f32.mrf.mxu1 }
 0x545   :  { %v1229_v53 = vadd.f32 %v1387_v36, %v1166_v56  ;;  %v1230_v46 = vadd.f32 %v1388_v37, %v1186_v44 }
 0x547   :  { %v1391_v45 = vmul.f32 -1.442695, %v1229_v53  ;;  %v1392_v57 = vmul.f32 -1.442695, %v1230_v46 }
 0x549   :  { %1508 = vpow2.f32 %v1391_v45 }
 0x54a   :  { %1510 = vpow2.f32 %v1392_v57 }
 0x54b   :  { %v1226_v58 = vpop.f32.mrf.mxu3  ;;  %v1206_v20 = vpop.f32.mrf.mxu2 }
 0x54c   :  { %v1232_v48 = vadd.f32 %v1390_v55, %v1226_v58  ;;  %v1231_v0 = vadd.f32 %v1389_v1, %v1206_v20 }
 0x54e   :  { %v1393_v12 = vmul.f32 -1.442695, %v1232_v48 }
 0x54f   :  { %v1509_v51 = vpop.eup %1508 }
 0x550   :  { %v1511_v61 = vpop.eup %1510  ;;  %v1236_v59 = vadd.f32 1.0, %v1509_v51  ;;  %1512 = vpow2.f32 %v1393_v12 }
 0x551   :  { %v1255_v54 = vadd.f32 1.0, %v1511_v61 }
 0x552   :  { %1514 = vrcp.f32 %v1236_v59  ;;  %v1248_v14 = vand.u32 2147483648, %v1236_v59  ;;  %v1246_v13 = vand.u32 2147483647, %v1236_v59  ;;  %vm1242_vm6 = vweird.f32 %v1236_v59 }
 0x553   :  { %1516 = vrcp.f32 %v1255_v54  ;;  %v1267_v6 = vand.u32 2147483648, %v1255_v54  ;;  %v1265_v16 = vand.u32 2147483647, %v1255_v54  ;;  %vm1261_vm7 = vweird.f32 %v1255_v54 }
 0x554   :  { %v1249_v50 = vor.u32 1.1754944e-38, %v1248_v14  ;;  %vm1247_vm10 = vcmp.eq.f32.partialorder %v1246_v13, 8.507059e+37 }
 0x555   :  { %v1268_v23 = vor.u32 1.1754944e-38, %v1267_v6  ;;  %vm1266_vm11 = vcmp.eq.f32.partialorder %v1265_v16, 8.507059e+37 }
 0x556   :  { %v1513_v8 = vpop.eup %1512 }
 0x557   :  { %v1275_v17 = vadd.f32 1.0, %v1513_v8 }
 0x558   :  { %v1515_v4 = vpop.eup %1514 }
 0x559   :  { %v1517_v10 = vpop.eup %1516  ;;  %v1238_v3 = vmul.f32 %v1515_v4, %v1236_v59  ;;  %1518 = vrcp.f32 %v1275_v17  ;;  %vm1243_vm4 = vweird.f32 %v1515_v4  ;;  %v1287_v43 = vand.u32 2147483648, %v1275_v17 }
 0x55a   :  { %v1257_v11 = vmul.f32 %v1517_v10, %v1255_v54  ;;  %1520 = vtanh.f32 %v1231_v0  ;;  %vm1262_vm5 = vweird.f32 %v1517_v10  ;;  %vm1244_vm8 = vmor %vm1242_vm6, %vm1243_vm4  ;;  %vm1281_vm13 = vweird.f32 %v1275_v17 }
 0x55b   :  { %v1239_v7 = vsub.f32 1.0, %v1238_v3  ;;  %vm1263_vm9 = vmor %vm1261_vm7, %vm1262_vm5  ;;  %v1285_v47 = vand.u32 2147483647, %v1275_v17  ;;  %v1288_v63 = vor.u32 1.1754944e-38, %v1287_v43 }
 0x55c   :  { %v1258_v19 = vsub.f32 1.0, %v1257_v11 }
 0x55d   :  { %v1240_v49 = vmul.f32 %v1515_v4, %v1239_v7  ;;  %vm1286_vm15 = vcmp.eq.f32.partialorder %v1285_v47, 8.507059e+37 }
 0x55e   :  { %v1259_v42 = vmul.f32 %v1517_v10, %v1258_v19 }
 0x55f   :  { %v1519_v18 = vpop.eup %1518  ;;  %v1241_v9 = vadd.f32 %v1515_v4, %v1240_v49 }
 0x560   :  { %v1260_v21 = vadd.f32 %v1517_v10, %v1259_v42  ;;  %v1277_v22 = vmul.f32 %v1519_v18, %v1275_v17  ;;  %v1521_v26 = vpop.eup %1520  ;;  %vm1282_vm12 = vweird.f32 %v1519_v18 }
 0x561   :  { %v1245_v25 = vsel %vm1244_vm8, %v1515_v4, %v1241_v9  ;;  %vm1283_vm14 = vmor %vm1281_vm13, %vm1282_vm12 }
 0x562   :  { %v1250_v27 = vsel %vm1247_vm10, %v1249_v50, %v1245_v25  ;;  %v1264_v28 = vsel %vm1263_vm9, %v1517_v10, %v1260_v21  ;;  %v1278_v29 = vsub.f32 1.0, %v1277_v22 }
 0x563   :  { %v1269_v30 = vsel %vm1266_vm11, %v1268_v23, %v1264_v28  ;;  %v1292_v32 = vmul.f32 %v1521_v26, %v1250_v27 }
 0x564   :  { %v1291_v33 = vmul.f32 %v1269_v30, %v2874_v24  ;;  %v1279_v31 = vmul.f32 %v1519_v18, %v1278_v29  ;;  %v1395_v24 = vld [vmem:[%s2946_s3] ss:$0 sm:$0xff] }
 0x566   :  { %v1293_v35 = vadd.f32 %v1292_v32, %v1291_v33  ;;  %v1280_v39 = vadd.f32 %v1519_v18, %v1279_v31 }
 0x568   :  { %1522 = vtanh.f32 %v1293_v35  ;;  %v1284_v60 = vsel %vm1283_vm14, %v1519_v18, %v1280_v39 }
 0x569   :  { %v1289_v34 = vsel %vm1286_vm15, %v1288_v63, %v1284_v60 }
 0x56e   :  { %v1523_v15 = vpop.eup %1522 }
 0x56f   :  { %v1295_v36 = vmul.f32 %v1523_v15, %v1289_v34 }
 0x571   :  { %1332 = vmatmul.f32.vlgmr.msra.gmra.mxu0 %v1295_v36 }
 0x5ee   :  { %v1333_v37 = vpop.f32.mrf.mxu0 }
 0x5ef   :  { %v1334_v40 = vadd.f32 %v1395_v24, %v1333_v37 }
 0x5f1   :  { %1337 = vst.msk [vmem:[%s2948_s4] sm:$0xff] %vm1336_vm0, %v1334_v40 }

</bundles_post_ra>
